<compile_context>
chip_gen: v6e
topology: v6e:2x2x1
jax: 0.10.0
libtpu: 0.0.40
codegen_flags: <defaults>
</compile_context>

<pallas_src>
import jax
import jax.numpy as jnp
from jax import lax
from jax.experimental import pallas as pl
from jax.experimental.pallas import tpu as pltpu

HIDDEN_SIZE = 64
NUM_LAYERS = 2
OUT_DIM = 3
FC_PAD = 128      # lane-dense FC output width


# ----------------------------------------------------------------------------
# Fused kernel: bulk layer-1 projection + wavefront 2-layer recurrence + FC head
# ----------------------------------------------------------------------------
def _fused_lstm_kernel(x_ref, wx8_ref, b8_ref, wstack_ref, wfc_ref, bfc_ref,
                       out_ref, xg_scr):
    """Whole model forward in one kernel invocation.

    x_ref      : (T*Bp, D)      f32  time-major flattened input (row t*Bp + b)
    wx8_ref    : (D, 8H)        bf16 layer-1 input->gates weight, interleaved
                                     columns [i1|i2|f1|f2|o1|o2|g1|g2]; layer-2
                                     column blocks are zero.
    b8_ref     : (1, 8H)        f32  fused biases in the same interleaved order
                                     ([b1 gates] in layer-1 cols, [b2] in layer-2).
    wstack_ref : (2H, 8H)       bf16 wavefront-stacked recurrent weight:
                                     [h1(t), h2(t-1)] @ wstack ->
                                     [layer-1 recurrent part for t+1 | layer-2 gates t]
    wfc_ref    : (H, 128)       bf16 FC weight (cols 3: zero-padded)
    bfc_ref    : (1, 128)       f32  FC bias (padded)
    out_ref    : (Bp, 128)      f32  lane-dense output
    xg_scr     : ((T+1)*Bp,8H)  f32  precomputed input gates + biases
    """
    Bp = out_ref.shape[0]
    H = wstack_ref.shape[0] // 2
    T = x_ref.shape[0] // Bp
    H2, H4, H6, H8 = 2 * H, 4 * H, 6 * H, 8 * H

    # ---- Phase 1: bulk layer-1 input projection, hoisted out of the loop ----
    # Row block t holds [x(t)@Wx1 + b1 | b2] (layer-2 cols of wx8 are zero).
    x_all = x_ref[...].astype(jnp.bfloat16)                          # (T*Bp, D)
    xg = jnp.dot(x_all, wx8_ref[...],
                 preferred_element_type=jnp.float32) + b8_ref[...]   # (T*Bp, 8H)
    xg_scr[pl.ds(0, T * Bp), :] = xg
    # Extra row block is read by the last wavefront step: its layer-2 columns
    # must still carry b2 (layer-1 half of that step is discarded).
    xg_scr[pl.ds(T * Bp, Bp), :] = jnp.broadcast_to(b8_ref[...], (Bp, H8))

    # ---- Phase 2: wavefront recurrence; packed carries live in vregs ----
    wstack = wstack_ref[...]                         # hoisted RHS, resident bf16

    lane = lax.broadcasted_iota(jnp.int32, (Bp, H2), 1)
    l1_mask = (lane < H).astype(jnp.float32)         # 1 on layer-1 cols, 0 on layer-2

    # Prologue: h1(0), c1(0) from xg(0) (zero initial state); mask restores the
    # true zero initial h2/c2 in the packed layer-2 half.
    pre0 = xg_scr[pl.ds(0, Bp), :]                   # (Bp, 8H)
    sg0 = jax.nn.sigmoid(pre0[:, :H6])               # [i1|i2|f1|f2|o1|o2]
    th0 = jnp.tanh(pre0[:, H6:])                     # [g1|g2]
    cp = (sg0[:, :H2] * th0) * l1_mask               # [c1(0), 0]
    hp = sg0[:, H4:H6] * jnp.tanh(cp)                # [h1(0), 0]

    def step(t, carry):
        hp, cp = carry                               # [h1(t), h2(t-1)], [c1(t), c2(t-1)]
        # Single wavefront MXU push: layer-1 recurrent term for t+1 AND the full
        # layer-2 gate contribution for t.
        r = jnp.dot(hp.astype(jnp.bfloat16), wstack,
                    preferred_element_type=jnp.float32)              # (Bp, 8H)
        row = pl.multiple_of((t + 1) * Bp, 8)                        # 8-aligned start
        pre = r + xg_scr[pl.ds(row, Bp), :]
        sg = jax.nn.sigmoid(pre[:, :H6])             # one contiguous (Bp, 6H) slab
        th = jnp.tanh(pre[:, H6:])                   # (Bp, 2H)
        cp_new = sg[:, H2:H4] * cp + sg[:, :H2] * th  # [c1(t+1), c2(t)]
        hp_new = sg[:, H4:H6] * jnp.tanh(cp_new)      # [h1(t+1), h2(t)]
        return hp_new, cp_new

    hp, cp = lax.fori_loop(0, T, step, (hp, cp),
                           unroll=True if T <= 32 else 4)

    # ---- Phase 3: lane-dense FC head on h_n[-1] = h2(T-1) only ----
    h_last = hp[:, H:H2]                                             # (Bp, H)
    out_ref[...] = (
        jnp.dot(h_last.astype(jnp.bfloat16), wfc_ref[...],
                preferred_element_type=jnp.float32)
        + bfc_ref[...]
    )


# ----------------------------------------------------------------------------
# Wrapper
# ----------------------------------------------------------------------------
@jax.jit
def lstm_forward(params, x_btd):
    """Full module forward: x (B, T, D) -> (B, 3)."""
    B, T, D = x_btd.shape
    H = HIDDEN_SIZE
    B_pad = max(8, ((B + 7) // 8) * 8)

    # time-major, batch padded to a sublane multiple, flattened 2-D
    x_tbd = jnp.transpose(x_btd, (1, 0, 2))
    if B_pad != B:
        x_tbd = jnp.pad(x_tbd, ((0, 0), (0, B_pad - B), (0, 0)))
    x2d = x_tbd.reshape(T * B_pad, D)

    flops = (2 * T * B_pad * D * 8 * H            # bulk input projection
             + 2 * T * B_pad * 2 * H * 8 * H      # wavefront recurrence
             + 2 * B_pad * H * FC_PAD)            # FC head
    transcendentals = (T + 1) * B_pad * 10 * H
    bytes_accessed = (x2d.size * 4
                      + params["wx8"].size * 2 + params["b8"].size * 4
                      + params["wstack"].size * 2
                      + params["wfc"].size * 2 + params["bfc"].size * 4
                      + B_pad * FC_PAD * 4)

    vmem_spec = pl.BlockSpec(memory_space=pltpu.MemorySpace.VMEM)

    out_full = pl.pallas_call(
        _fused_lstm_kernel,
        out_shape=jax.ShapeDtypeStruct((B_pad, FC_PAD), jnp.float32),
        in_specs=[vmem_spec] * 6,
        out_specs=vmem_spec,
        scratch_shapes=[pltpu.VMEM(((T + 1) * B_pad, 8 * H), jnp.float32)],
        compiler_params=pltpu.CompilerParams(
            vmem_limit_bytes=32 * 1024 * 1024),
        cost_estimate=pl.CostEstimate(flops=flops,
                                      transcendentals=transcendentals,
                                      bytes_accessed=bytes_accessed),
    )(x2d, params["wx8"], params["b8"], params["wstack"],
      params["wfc"], params["bfc"])

    return out_full[:B, :OUT_DIM]


# ----------------------------------------------------------------------------
# Parameter init (PyTorch layout) + offline packing for the kernel
# ----------------------------------------------------------------------------
def init_raw_params(key, input_dim):
    """PyTorch-style uniform(-1/sqrt(H), 1/sqrt(H)) init, PyTorch layouts."""
    H = HIDDEN_SIZE
    k = 1.0 / float(H) ** 0.5

    def unif(kk, shape):
        return jax.random.uniform(kk, shape, jnp.float32, -k, k)

    keys = jax.random.split(key, 10)
    return {
        "w_ih0": unif(keys[0], (4 * H, input_dim)),
        "w_hh0": unif(keys[1], (4 * H, H)),
        "b_ih0": unif(keys[2], (4 * H,)),
        "b_hh0": unif(keys[3], (4 * H,)),
        "w_ih1": unif(keys[4], (4 * H, H)),
        "w_hh1": unif(keys[5], (4 * H, H)),
        "b_ih1": unif(keys[6], (4 * H,)),
        "b_hh1": unif(keys[7], (4 * H,)),
        "w_fc": unif(keys[8], (OUT_DIM, H)),
        "b_fc": unif(keys[9], (OUT_DIM,)),
    }


def _gate_split(w):
    """Split trailing 4H gate axis (torch order i,f,g,o) into H-wide blocks."""
    H = HIDDEN_SIZE
    return w[..., 0:H], w[..., H:2 * H], w[..., 2 * H:3 * H], w[..., 3 * H:4 * H]


def _interleave(l1, l2):
    """Interleaved column layout [i1|i2|f1|f2|o1|o2|g1|g2] (each block H wide)."""
    i1, f1, g1, o1 = l1
    i2, f2, g2, o2 = l2
    return jnp.concatenate([i1, i2, f1, f2, o1, o2, g1, g2], axis=-1)


def pack_params(raw, input_dim):
    """Build the wavefront-stacked / interleaved / padded kernel parameters."""
    H = HIDDEN_SIZE
    D = input_dim
    zD = jnp.zeros((D, H), jnp.float32)
    zH = jnp.zeros((H, H), jnp.float32)

    wx1 = raw["w_ih0"].T          # (D, 4H)
    wh1 = raw["w_hh0"].T          # (H, 4H)
    wx2 = raw["w_ih1"].T          # (H, 4H)
    wh2 = raw["w_hh1"].T          # (H, 4H)
    b1 = (raw["b_ih0"] + raw["b_hh0"])[None, :]   # (1, 4H)
    b2 = (raw["b_ih1"] + raw["b_hh1"])[None, :]   # (1, 4H)

    # Bulk input projection weight: layer-2 gate columns are zero so the folded
    # bias add leaves exactly b2 there (no per-step scatter in the loop).
    wx8 = _interleave(_gate_split(wx1), (zD, zD, zD, zD))          # (D, 8H)
    b8 = _interleave(_gate_split(b1), _gate_split(b2))             # (1, 8H)

    # Wavefront-stacked recurrent weight: [[Wh1, Wx2], [0, Wh2]].
    top = _interleave(_gate_split(wh1), _gate_split(wx2))          # (H, 8H)
    bot = _interleave((zH, zH, zH, zH), _gate_split(wh2))          # (H, 8H)
    wstack = jnp.concatenate([top, bot], axis=0)                   # (2H, 8H)

    # Lane-dense FC head: pad (H, 3) -> (H, 128).
    wfc = jnp.zeros((H, FC_PAD), jnp.float32).at[:, :OUT_DIM].set(raw["w_fc"].T)
    bfc = jnp.zeros((1, FC_PAD), jnp.float32).at[0, :OUT_DIM].set(raw["b_fc"])

    return {
        "wx8": wx8.astype(jnp.bfloat16),
        "b8": b8,
        "wstack": wstack.astype(jnp.bfloat16),
        "wfc": wfc.astype(jnp.bfloat16),
        "bfc": bfc,
    }


# ----------------------------------------------------------------------------
# Pure-JAX reference (standard layout; mirrors bf16-matmul / f32-gate math)
# ----------------------------------------------------------------------------
def lstm_forward_ref(raw, x_btd):
    B, T, D = x_btd.shape
    H = HIDDEN_SIZE
    wx1 = raw["w_ih0"].T.astype(jnp.bfloat16)
    wh1 = raw["w_hh0"].T.astype(jnp.bfloat16)
    b1 = (raw["b_ih0"] + raw["b_hh0"])[None, :]
    wx2 = raw["w_ih1"].T.astype(jnp.bfloat16)
    wh2 = raw["w_hh1"].T.astype(jnp.bfloat16)
    b2 = (raw["b_ih1"] + raw["b_hh1"])[None, :]
    wfc = raw["w_fc"].T.astype(jnp.bfloat16)
    bfc = raw["b_fc"][None, :]

    def cell(x, h, c, wx, wh, b):
        g = (jnp.dot(x.astype(jnp.bfloat16), wx, preferred_element_type=jnp.float32)
             + jnp.dot(h.astype(jnp.bfloat16), wh, preferred_element_type=jnp.float32)
             + b)
        i = jax.nn.sigmoid(g[:, 0 * H:1 * H])
        f = jax.nn.sigmoid(g[:, 1 * H:2 * H])
        gg = jnp.tanh(g[:, 2 * H:3 * H])
        o = jax.nn.sigmoid(g[:, 3 * H:4 * H])
        c = f * c + i * gg
        h = o * jnp.tanh(c)
        return h, c

    h1 = c1 = h2 = c2 = jnp.zeros((B, H), jnp.float32)
    for t in range(T):
        h1, c1 = cell(x_btd[:, t, :], h1, c1, wx1, wh1, b1)
        h2, c2 = cell(h1, h2, c2, wx2, wh2, b2)
    return (jnp.dot(h2.astype(jnp.bfloat16), wfc,
                    preferred_element_type=jnp.float32) + bfc)


if __name__ == "__main__":
    B, T, D = 2, 8, 4     # batch=2, seq=8, input_dim=4
    key = jax.random.PRNGKey(0)
    kx, kp = jax.random.split(key)
    x = jax.random.normal(kx, (B, T, D), jnp.float32)

    raw = init_raw_params(kp, D)
    params = pack_params(raw, D)

    out = jax.block_until_ready(lstm_forward(params, x))
    assert out.shape == (B, OUT_DIM), out.shape

    ref = lstm_forward_ref(raw, x)
    assert jnp.allclose(out, ref, atol=2e-3, rtol=2e-3), (out, ref)

    print("KERNEL_OK")
</pallas_src>

<mosaic_0001>
module attributes {stable_mosaic.version = 11 : i64} {
  func.func @_fused_lstm_kernel(%arg0: memref<64x4xf32, #tpu.memory_space<vmem>>, %arg1: memref<4x512xbf16, #tpu.memory_space<vmem>>, %arg2: memref<1x512xf32, #tpu.memory_space<vmem>>, %arg3: memref<128x512xbf16, #tpu.memory_space<vmem>>, %arg4: memref<64x128xbf16, #tpu.memory_space<vmem>>, %arg5: memref<1x128xf32, #tpu.memory_space<vmem>>, %arg6: memref<8x128xf32, #tpu.memory_space<vmem>>, %arg7: memref<72x512xf32, #tpu.memory_space<vmem>>) attributes {dimension_semantics = [], scalar_prefetch = 0 : i64, scratch_operands = 1 : i64, tpu.core_type = #tpu.core_type<tc>} {
    %c0 = arith.constant 0 : index
    %c0_0 = arith.constant 0 : index
    %0 = vector.load %arg0[%c0, %c0_0] : memref<64x4xf32, #tpu.memory_space<vmem>>, vector<64x4xf32>
    %1 = arith.truncf %0 : vector<64x4xf32> to vector<64x4xbf16>
    %c0_1 = arith.constant 0 : index
    %c0_2 = arith.constant 0 : index
    %2 = vector.load %arg1[%c0_1, %c0_2] : memref<4x512xbf16, #tpu.memory_space<vmem>>, vector<4x512xbf16>
    %cst = arith.constant dense<0.000000e+00> : vector<64x512xf32>
    %3 = tpu.matmul %1, %2, %cst {dimension_numbers = #tpu.dot_dimension_numbers<[1], [0], [0], [1], [0, 0, 1, 1], [], []>} : vector<64x4xbf16>, vector<4x512xbf16>, vector<64x512xf32> -> vector<64x512xf32>
    %c0_3 = arith.constant 0 : index
    %c0_4 = arith.constant 0 : index
    %4 = vector.load %arg2[%c0_3, %c0_4] : memref<1x512xf32, #tpu.memory_space<vmem>>, vector<1x512xf32>
    %5 = vector.broadcast %4 : vector<1x512xf32> to vector<64x512xf32>
    %6 = arith.addf %3, %5 : vector<64x512xf32>
    %c0_5 = arith.constant 0 : index
    %c0_6 = arith.constant 0 : index
    %7 = vector.load %arg7[%c0_5, %c0_6] : memref<72x512xf32, #tpu.memory_space<vmem>>, vector<64x512xf32>
    tpu.vector_store %arg7[%c0_5, %c0_6], %6 {strides = array<i32>} : memref<72x512xf32, #tpu.memory_space<vmem>>, vector<64x512xf32>,
    %c0_7 = arith.constant 0 : index
    %c0_8 = arith.constant 0 : index
    %8 = vector.load %arg2[%c0_7, %c0_8] : memref<1x512xf32, #tpu.memory_space<vmem>>, vector<1x512xf32>
    %9 = vector.shape_cast %8 : vector<1x512xf32> to vector<1x512xf32>
    %10 = vector.broadcast %9 : vector<1x512xf32> to vector<8x512xf32>
    %c64 = arith.constant 64 : index
    %c0_9 = arith.constant 0 : index
    %11 = vector.load %arg7[%c64, %c0_9] : memref<72x512xf32, #tpu.memory_space<vmem>>, vector<8x512xf32>
    tpu.vector_store %arg7[%c64, %c0_9], %10 {strides = array<i32>} : memref<72x512xf32, #tpu.memory_space<vmem>>, vector<8x512xf32>,
    %c0_10 = arith.constant 0 : index
    %c0_11 = arith.constant 0 : index
    %12 = vector.load %arg3[%c0_10, %c0_11] : memref<128x512xbf16, #tpu.memory_space<vmem>>, vector<128x512xbf16>
    %13 = tpu.iota {dimensions = array<i32: 1>} : vector<8x128xi32>
    %c64_i32 = arith.constant 64 : i32
    %14 = vector.broadcast %c64_i32 : i32 to vector<8x128xi32>
    %15 = arith.cmpi slt, %13, %14 : vector<8x128xi32>
    %16 = arith.extui %15 : vector<8x128xi1> to vector<8x128xi32>
    %17 = arith.sitofp %16 : vector<8x128xi32> to vector<8x128xf32>
    %c0_12 = arith.constant 0 : index
    %c0_13 = arith.constant 0 : index
    %18 = vector.load %arg7[%c0_12, %c0_13] : memref<72x512xf32, #tpu.memory_space<vmem>>, vector<8x512xf32>
    %19 = vector.extract_strided_slice %18 {offsets = [0, 0], sizes = [8, 384], strides = [1, 1]} : vector<8x512xf32> to vector<8x384xf32>
    %20 = arith.negf %19 : vector<8x384xf32>
    %21 = math.exp %20 : vector<8x384xf32>
    %cst_14 = arith.constant 1.000000e+00 : f32
    %22 = vector.broadcast %cst_14 : f32 to vector<8x384xf32>
    %23 = arith.addf %22, %21 : vector<8x384xf32>
    %24 = arith.divf %22, %23 : vector<8x384xf32>
    %25 = vector.extract_strided_slice %18 {offsets = [0, 384], sizes = [8, 128], strides = [1, 1]} : vector<8x512xf32> to vector<8x128xf32>
    %26 = math.tanh %25 : vector<8x128xf32>
    %27 = vector.extract_strided_slice %24 {offsets = [0, 0], sizes = [8, 128], strides = [1, 1]} : vector<8x384xf32> to vector<8x128xf32>
    %28 = arith.mulf %27, %26 : vector<8x128xf32>
    %29 = arith.mulf %28, %17 : vector<8x128xf32>
    %30 = vector.extract_strided_slice %24 {offsets = [0, 256], sizes = [8, 128], strides = [1, 1]} : vector<8x384xf32> to vector<8x128xf32>
    %31 = math.tanh %29 : vector<8x128xf32>
    %32 = arith.mulf %30, %31 : vector<8x128xf32>
    %c0_i32 = arith.constant 0 : i32
    %33 = arith.truncf %32 : vector<8x128xf32> to vector<8x128xbf16>
    %cst_15 = arith.constant dense<0.000000e+00> : vector<8x512xf32>
    %34 = tpu.matmul %33, %12, %cst_15 {dimension_numbers = #tpu.dot_dimension_numbers<[1], [0], [0], [1], [0, 0, 1, 1], [], []>} : vector<8x128xbf16>, vector<128x512xbf16>, vector<8x512xf32> -> vector<8x512xf32>
    %c1_i32 = arith.constant 1 : i32
    %35 = arith.addi %c0_i32, %c1_i32 : i32
    %c8_i32 = arith.constant 8 : i32
    %36 = arith.muli %35, %c8_i32 : i32
    %37 = tpu.assume_multiple %36, 8 : i32
    %38 = arith.index_cast %37 : i32 to index
    %c0_16 = arith.constant 0 : index
    %39 = vector.load %arg7[%38, %c0_16] : memref<72x512xf32, #tpu.memory_space<vmem>>, vector<8x512xf32>
    %40 = arith.addf %34, %39 : vector<8x512xf32>
    %41 = vector.extract_strided_slice %40 {offsets = [0, 0], sizes = [8, 384], strides = [1, 1]} : vector<8x512xf32> to vector<8x384xf32>
    %42 = arith.negf %41 : vector<8x384xf32>
    %43 = math.exp %42 : vector<8x384xf32>
    %cst_17 = arith.constant 1.000000e+00 : f32
    %44 = vector.broadcast %cst_17 : f32 to vector<8x384xf32>
    %45 = arith.addf %44, %43 : vector<8x384xf32>
    %46 = arith.divf %44, %45 : vector<8x384xf32>
    %47 = vector.extract_strided_slice %40 {offsets = [0, 384], sizes = [8, 128], strides = [1, 1]} : vector<8x512xf32> to vector<8x128xf32>
    %48 = math.tanh %47 : vector<8x128xf32>
    %49 = vector.extract_strided_slice %46 {offsets = [0, 128], sizes = [8, 128], strides = [1, 1]} : vector<8x384xf32> to vector<8x128xf32>
    %50 = arith.mulf %49, %29 : vector<8x128xf32>
    %51 = vector.extract_strided_slice %46 {offsets = [0, 0], sizes = [8, 128], strides = [1, 1]} : vector<8x384xf32> to vector<8x128xf32>
    %52 = arith.mulf %51, %48 : vector<8x128xf32>
    %53 = arith.addf %50, %52 : vector<8x128xf32>
    %54 = vector.extract_strided_slice %46 {offsets = [0, 256], sizes = [8, 128], strides = [1, 1]} : vector<8x384xf32> to vector<8x128xf32>
    %55 = math.tanh %53 : vector<8x128xf32>
    %56 = arith.mulf %54, %55 : vector<8x128xf32>
    %c1_i32_18 = arith.constant 1 : i32
    %57 = arith.truncf %56 : vector<8x128xf32> to vector<8x128xbf16>
    %cst_19 = arith.constant dense<0.000000e+00> : vector<8x512xf32>
    %58 = tpu.matmul %57, %12, %cst_19 {dimension_numbers = #tpu.dot_dimension_numbers<[1], [0], [0], [1], [0, 0, 1, 1], [], []>} : vector<8x128xbf16>, vector<128x512xbf16>, vector<8x512xf32> -> vector<8x512xf32>
    %c1_i32_20 = arith.constant 1 : i32
    %59 = arith.addi %c1_i32_18, %c1_i32_20 : i32
    %c8_i32_21 = arith.constant 8 : i32
    %60 = arith.muli %59, %c8_i32_21 : i32
    %61 = tpu.assume_multiple %60, 8 : i32
    %62 = arith.index_cast %61 : i32 to index
    %c0_22 = arith.constant 0 : index
    %63 = vector.load %arg7[%62, %c0_22] : memref<72x512xf32, #tpu.memory_space<vmem>>, vector<8x512xf32>
    %64 = arith.addf %58, %63 : vector<8x512xf32>
    %65 = vector.extract_strided_slice %64 {offsets = [0, 0], sizes = [8, 384], strides = [1, 1]} : vector<8x512xf32> to vector<8x384xf32>
    %66 = arith.negf %65 : vector<8x384xf32>
    %67 = math.exp %66 : vector<8x384xf32>
    %cst_23 = arith.constant 1.000000e+00 : f32
    %68 = vector.broadcast %cst_23 : f32 to vector<8x384xf32>
    %69 = arith.addf %68, %67 : vector<8x384xf32>
    %70 = arith.divf %68, %69 : vector<8x384xf32>
    %71 = vector.extract_strided_slice %64 {offsets = [0, 384], sizes = [8, 128], strides = [1, 1]} : vector<8x512xf32> to vector<8x128xf32>
    %72 = math.tanh %71 : vector<8x128xf32>
    %73 = vector.extract_strided_slice %70 {offsets = [0, 128], sizes = [8, 128], strides = [1, 1]} : vector<8x384xf32> to vector<8x128xf32>
    %74 = arith.mulf %73, %53 : vector<8x128xf32>
    %75 = vector.extract_strided_slice %70 {offsets = [0, 0], sizes = [8, 128], strides = [1, 1]} : vector<8x384xf32> to vector<8x128xf32>
    %76 = arith.mulf %75, %72 : vector<8x128xf32>
    %77 = arith.addf %74, %76 : vector<8x128xf32>
    %78 = vector.extract_strided_slice %70 {offsets = [0, 256], sizes = [8, 128], strides = [1, 1]} : vector<8x384xf32> to vector<8x128xf32>
    %79 = math.tanh %77 : vector<8x128xf32>
    %80 = arith.mulf %78, %79 : vector<8x128xf32>
    %c2_i32 = arith.constant 2 : i32
    %81 = arith.truncf %80 : vector<8x128xf32> to vector<8x128xbf16>
    %cst_24 = arith.constant dense<0.000000e+00> : vector<8x512xf32>
    %82 = tpu.matmul %81, %12, %cst_24 {dimension_numbers = #tpu.dot_dimension_numbers<[1], [0], [0], [1], [0, 0, 1, 1], [], []>} : vector<8x128xbf16>, vector<128x512xbf16>, vector<8x512xf32> -> vector<8x512xf32>
    %c1_i32_25 = arith.constant 1 : i32
    %83 = arith.addi %c2_i32, %c1_i32_25 : i32
    %c8_i32_26 = arith.constant 8 : i32
    %84 = arith.muli %83, %c8_i32_26 : i32
    %85 = tpu.assume_multiple %84, 8 : i32
    %86 = arith.index_cast %85 : i32 to index
    %c0_27 = arith.constant 0 : index
    %87 = vector.load %arg7[%86, %c0_27] : memref<72x512xf32, #tpu.memory_space<vmem>>, vector<8x512xf32>
    %88 = arith.addf %82, %87 : vector<8x512xf32>
    %89 = vector.extract_strided_slice %88 {offsets = [0, 0], sizes = [8, 384], strides = [1, 1]} : vector<8x512xf32> to vector<8x384xf32>
    %90 = arith.negf %89 : vector<8x384xf32>
    %91 = math.exp %90 : vector<8x384xf32>
    %cst_28 = arith.constant 1.000000e+00 : f32
    %92 = vector.broadcast %cst_28 : f32 to vector<8x384xf32>
    %93 = arith.addf %92, %91 : vector<8x384xf32>
    %94 = arith.divf %92, %93 : vector<8x384xf32>
    %95 = vector.extract_strided_slice %88 {offsets = [0, 384], sizes = [8, 128], strides = [1, 1]} : vector<8x512xf32> to vector<8x128xf32>
    %96 = math.tanh %95 : vector<8x128xf32>
    %97 = vector.extract_strided_slice %94 {offsets = [0, 128], sizes = [8, 128], strides = [1, 1]} : vector<8x384xf32> to vector<8x128xf32>
    %98 = arith.mulf %97, %77 : vector<8x128xf32>
    %99 = vector.extract_strided_slice %94 {offsets = [0, 0], sizes = [8, 128], strides = [1, 1]} : vector<8x384xf32> to vector<8x128xf32>
    %100 = arith.mulf %99, %96 : vector<8x128xf32>
    %101 = arith.addf %98, %100 : vector<8x128xf32>
    %102 = vector.extract_strided_slice %94 {offsets = [0, 256], sizes = [8, 128], strides = [1, 1]} : vector<8x384xf32> to vector<8x128xf32>
    %103 = math.tanh %101 : vector<8x128xf32>
    %104 = arith.mulf %102, %103 : vector<8x128xf32>
    %c3_i32 = arith.constant 3 : i32
    %105 = arith.truncf %104 : vector<8x128xf32> to vector<8x128xbf16>
    %cst_29 = arith.constant dense<0.000000e+00> : vector<8x512xf32>
    %106 = tpu.matmul %105, %12, %cst_29 {dimension_numbers = #tpu.dot_dimension_numbers<[1], [0], [0], [1], [0, 0, 1, 1], [], []>} : vector<8x128xbf16>, vector<128x512xbf16>, vector<8x512xf32> -> vector<8x512xf32>
    %c1_i32_30 = arith.constant 1 : i32
    %107 = arith.addi %c3_i32, %c1_i32_30 : i32
    %c8_i32_31 = arith.constant 8 : i32
    %108 = arith.muli %107, %c8_i32_31 : i32
    %109 = tpu.assume_multiple %108, 8 : i32
    %110 = arith.index_cast %109 : i32 to index
    %c0_32 = arith.constant 0 : index
    %111 = vector.load %arg7[%110, %c0_32] : memref<72x512xf32, #tpu.memory_space<vmem>>, vector<8x512xf32>
    %112 = arith.addf %106, %111 : vector<8x512xf32>
    %113 = vector.extract_strided_slice %112 {offsets = [0, 0], sizes = [8, 384], strides = [1, 1]} : vector<8x512xf32> to vector<8x384xf32>
    %114 = arith.negf %113 : vector<8x384xf32>
    %115 = math.exp %114 : vector<8x384xf32>
    %cst_33 = arith.constant 1.000000e+00 : f32
    %116 = vector.broadcast %cst_33 : f32 to vector<8x384xf32>
    %117 = arith.addf %116, %115 : vector<8x384xf32>
    %118 = arith.divf %116, %117 : vector<8x384xf32>
    %119 = vector.extract_strided_slice %112 {offsets = [0, 384], sizes = [8, 128], strides = [1, 1]} : vector<8x512xf32> to vector<8x128xf32>
    %120 = math.tanh %119 : vector<8x128xf32>
    %121 = vector.extract_strided_slice %118 {offsets = [0, 128], sizes = [8, 128], strides = [1, 1]} : vector<8x384xf32> to vector<8x128xf32>
    %122 = arith.mulf %121, %101 : vector<8x128xf32>
    %123 = vector.extract_strided_slice %118 {offsets = [0, 0], sizes = [8, 128], strides = [1, 1]} : vector<8x384xf32> to vector<8x128xf32>
    %124 = arith.mulf %123, %120 : vector<8x128xf32>
    %125 = arith.addf %122, %124 : vector<8x128xf32>
    %126 = vector.extract_strided_slice %118 {offsets = [0, 256], sizes = [8, 128], strides = [1, 1]} : vector<8x384xf32> to vector<8x128xf32>
    %127 = math.tanh %125 : vector<8x128xf32>
    %128 = arith.mulf %126, %127 : vector<8x128xf32>
    %c4_i32 = arith.constant 4 : i32
    %129 = arith.truncf %128 : vector<8x128xf32> to vector<8x128xbf16>
    %cst_34 = arith.constant dense<0.000000e+00> : vector<8x512xf32>
    %130 = tpu.matmul %129, %12, %cst_34 {dimension_numbers = #tpu.dot_dimension_numbers<[1], [0], [0], [1], [0, 0, 1, 1], [], []>} : vector<8x128xbf16>, vector<128x512xbf16>, vector<8x512xf32> -> vector<8x512xf32>
    %c1_i32_35 = arith.constant 1 : i32
    %131 = arith.addi %c4_i32, %c1_i32_35 : i32
    %c8_i32_36 = arith.constant 8 : i32
    %132 = arith.muli %131, %c8_i32_36 : i32
    %133 = tpu.assume_multiple %132, 8 : i32
    %134 = arith.index_cast %133 : i32 to index
    %c0_37 = arith.constant 0 : index
    %135 = vector.load %arg7[%134, %c0_37] : memref<72x512xf32, #tpu.memory_space<vmem>>, vector<8x512xf32>
    %136 = arith.addf %130, %135 : vector<8x512xf32>
    %137 = vector.extract_strided_slice %136 {offsets = [0, 0], sizes = [8, 384], strides = [1, 1]} : vector<8x512xf32> to vector<8x384xf32>
    %138 = arith.negf %137 : vector<8x384xf32>
    %139 = math.exp %138 : vector<8x384xf32>
    %cst_38 = arith.constant 1.000000e+00 : f32
    %140 = vector.broadcast %cst_38 : f32 to vector<8x384xf32>
    %141 = arith.addf %140, %139 : vector<8x384xf32>
    %142 = arith.divf %140, %141 : vector<8x384xf32>
    %143 = vector.extract_strided_slice %136 {offsets = [0, 384], sizes = [8, 128], strides = [1, 1]} : vector<8x512xf32> to vector<8x128xf32>
    %144 = math.tanh %143 : vector<8x128xf32>
    %145 = vector.extract_strided_slice %142 {offsets = [0, 128], sizes = [8, 128], strides = [1, 1]} : vector<8x384xf32> to vector<8x128xf32>
    %146 = arith.mulf %145, %125 : vector<8x128xf32>
    %147 = vector.extract_strided_slice %142 {offsets = [0, 0], sizes = [8, 128], strides = [1, 1]} : vector<8x384xf32> to vector<8x128xf32>
    %148 = arith.mulf %147, %144 : vector<8x128xf32>
    %149 = arith.addf %146, %148 : vector<8x128xf32>
    %150 = vector.extract_strided_slice %142 {offsets = [0, 256], sizes = [8, 128], strides = [1, 1]} : vector<8x384xf32> to vector<8x128xf32>
    %151 = math.tanh %149 : vector<8x128xf32>
    %152 = arith.mulf %150, %151 : vector<8x128xf32>
    %c5_i32 = arith.constant 5 : i32
    %153 = arith.truncf %152 : vector<8x128xf32> to vector<8x128xbf16>
    %cst_39 = arith.constant dense<0.000000e+00> : vector<8x512xf32>
    %154 = tpu.matmul %153, %12, %cst_39 {dimension_numbers = #tpu.dot_dimension_numbers<[1], [0], [0], [1], [0, 0, 1, 1], [], []>} : vector<8x128xbf16>, vector<128x512xbf16>, vector<8x512xf32> -> vector<8x512xf32>
    %c1_i32_40 = arith.constant 1 : i32
    %155 = arith.addi %c5_i32, %c1_i32_40 : i32
    %c8_i32_41 = arith.constant 8 : i32
    %156 = arith.muli %155, %c8_i32_41 : i32
    %157 = tpu.assume_multiple %156, 8 : i32
    %158 = arith.index_cast %157 : i32 to index
    %c0_42 = arith.constant 0 : index
    %159 = vector.load %arg7[%158, %c0_42] : memref<72x512xf32, #tpu.memory_space<vmem>>, vector<8x512xf32>
    %160 = arith.addf %154, %159 : vector<8x512xf32>
    %161 = vector.extract_strided_slice %160 {offsets = [0, 0], sizes = [8, 384], strides = [1, 1]} : vector<8x512xf32> to vector<8x384xf32>
    %162 = arith.negf %161 : vector<8x384xf32>
    %163 = math.exp %162 : vector<8x384xf32>
    %cst_43 = arith.constant 1.000000e+00 : f32
    %164 = vector.broadcast %cst_43 : f32 to vector<8x384xf32>
    %165 = arith.addf %164, %163 : vector<8x384xf32>
    %166 = arith.divf %164, %165 : vector<8x384xf32>
    %167 = vector.extract_strided_slice %160 {offsets = [0, 384], sizes = [8, 128], strides = [1, 1]} : vector<8x512xf32> to vector<8x128xf32>
    %168 = math.tanh %167 : vector<8x128xf32>
    %169 = vector.extract_strided_slice %166 {offsets = [0, 128], sizes = [8, 128], strides = [1, 1]} : vector<8x384xf32> to vector<8x128xf32>
    %170 = arith.mulf %169, %149 : vector<8x128xf32>
    %171 = vector.extract_strided_slice %166 {offsets = [0, 0], sizes = [8, 128], strides = [1, 1]} : vector<8x384xf32> to vector<8x128xf32>
    %172 = arith.mulf %171, %168 : vector<8x128xf32>
    %173 = arith.addf %170, %172 : vector<8x128xf32>
    %174 = vector.extract_strided_slice %166 {offsets = [0, 256], sizes = [8, 128], strides = [1, 1]} : vector<8x384xf32> to vector<8x128xf32>
    %175 = math.tanh %173 : vector<8x128xf32>
    %176 = arith.mulf %174, %175 : vector<8x128xf32>
    %c6_i32 = arith.constant 6 : i32
    %177 = arith.truncf %176 : vector<8x128xf32> to vector<8x128xbf16>
    %cst_44 = arith.constant dense<0.000000e+00> : vector<8x512xf32>
    %178 = tpu.matmul %177, %12, %cst_44 {dimension_numbers = #tpu.dot_dimension_numbers<[1], [0], [0], [1], [0, 0, 1, 1], [], []>} : vector<8x128xbf16>, vector<128x512xbf16>, vector<8x512xf32> -> vector<8x512xf32>
    %c1_i32_45 = arith.constant 1 : i32
    %179 = arith.addi %c6_i32, %c1_i32_45 : i32
    %c8_i32_46 = arith.constant 8 : i32
    %180 = arith.muli %179, %c8_i32_46 : i32
    %181 = tpu.assume_multiple %180, 8 : i32
    %182 = arith.index_cast %181 : i32 to index
    %c0_47 = arith.constant 0 : index
    %183 = vector.load %arg7[%182, %c0_47] : memref<72x512xf32, #tpu.memory_space<vmem>>, vector<8x512xf32>
    %184 = arith.addf %178, %183 : vector<8x512xf32>
    %185 = vector.extract_strided_slice %184 {offsets = [0, 0], sizes = [8, 384], strides = [1, 1]} : vector<8x512xf32> to vector<8x384xf32>
    %186 = arith.negf %185 : vector<8x384xf32>
    %187 = math.exp %186 : vector<8x384xf32>
    %cst_48 = arith.constant 1.000000e+00 : f32
    %188 = vector.broadcast %cst_48 : f32 to vector<8x384xf32>
    %189 = arith.addf %188, %187 : vector<8x384xf32>
    %190 = arith.divf %188, %189 : vector<8x384xf32>
    %191 = vector.extract_strided_slice %184 {offsets = [0, 384], sizes = [8, 128], strides = [1, 1]} : vector<8x512xf32> to vector<8x128xf32>
    %192 = math.tanh %191 : vector<8x128xf32>
    %193 = vector.extract_strided_slice %190 {offsets = [0, 128], sizes = [8, 128], strides = [1, 1]} : vector<8x384xf32> to vector<8x128xf32>
    %194 = arith.mulf %193, %173 : vector<8x128xf32>
    %195 = vector.extract_strided_slice %190 {offsets = [0, 0], sizes = [8, 128], strides = [1, 1]} : vector<8x384xf32> to vector<8x128xf32>
    %196 = arith.mulf %195, %192 : vector<8x128xf32>
    %197 = arith.addf %194, %196 : vector<8x128xf32>
    %198 = vector.extract_strided_slice %190 {offsets = [0, 256], sizes = [8, 128], strides = [1, 1]} : vector<8x384xf32> to vector<8x128xf32>
    %199 = math.tanh %197 : vector<8x128xf32>
    %200 = arith.mulf %198, %199 : vector<8x128xf32>
    %c7_i32 = arith.constant 7 : i32
    %201 = arith.truncf %200 : vector<8x128xf32> to vector<8x128xbf16>
    %cst_49 = arith.constant dense<0.000000e+00> : vector<8x512xf32>
    %202 = tpu.matmul %201, %12, %cst_49 {dimension_numbers = #tpu.dot_dimension_numbers<[1], [0], [0], [1], [0, 0, 1, 1], [], []>} : vector<8x128xbf16>, vector<128x512xbf16>, vector<8x512xf32> -> vector<8x512xf32>
    %c1_i32_50 = arith.constant 1 : i32
    %203 = arith.addi %c7_i32, %c1_i32_50 : i32
    %c8_i32_51 = arith.constant 8 : i32
    %204 = arith.muli %203, %c8_i32_51 : i32
    %205 = tpu.assume_multiple %204, 8 : i32
    %206 = arith.index_cast %205 : i32 to index
    %c0_52 = arith.constant 0 : index
    %207 = vector.load %arg7[%206, %c0_52] : memref<72x512xf32, #tpu.memory_space<vmem>>, vector<8x512xf32>
    %208 = arith.addf %202, %207 : vector<8x512xf32>
    %209 = vector.extract_strided_slice %208 {offsets = [0, 0], sizes = [8, 384], strides = [1, 1]} : vector<8x512xf32> to vector<8x384xf32>
    %210 = arith.negf %209 : vector<8x384xf32>
    %211 = math.exp %210 : vector<8x384xf32>
    %cst_53 = arith.constant 1.000000e+00 : f32
    %212 = vector.broadcast %cst_53 : f32 to vector<8x384xf32>
    %213 = arith.addf %212, %211 : vector<8x384xf32>
    %214 = arith.divf %212, %213 : vector<8x384xf32>
    %215 = vector.extract_strided_slice %208 {offsets = [0, 384], sizes = [8, 128], strides = [1, 1]} : vector<8x512xf32> to vector<8x128xf32>
    %216 = math.tanh %215 : vector<8x128xf32>
    %217 = vector.extract_strided_slice %214 {offsets = [0, 128], sizes = [8, 128], strides = [1, 1]} : vector<8x384xf32> to vector<8x128xf32>
    %218 = arith.mulf %217, %197 : vector<8x128xf32>
    %219 = vector.extract_strided_slice %214 {offsets = [0, 0], sizes = [8, 128], strides = [1, 1]} : vector<8x384xf32> to vector<8x128xf32>
    %220 = arith.mulf %219, %216 : vector<8x128xf32>
    %221 = arith.addf %218, %220 : vector<8x128xf32>
    %222 = vector.extract_strided_slice %214 {offsets = [0, 256], sizes = [8, 128], strides = [1, 1]} : vector<8x384xf32> to vector<8x128xf32>
    %223 = math.tanh %221 : vector<8x128xf32>
    %224 = arith.mulf %222, %223 : vector<8x128xf32>
    %c8_i32_54 = arith.constant 8 : i32
    %225 = vector.extract_strided_slice %224 {offsets = [0, 64], sizes = [8, 64], strides = [1, 1]} : vector<8x128xf32> to vector<8x64xf32>
    %226 = arith.truncf %225 : vector<8x64xf32> to vector<8x64xbf16>
    %c0_55 = arith.constant 0 : index
    %c0_56 = arith.constant 0 : index
    %227 = vector.load %arg4[%c0_55, %c0_56] : memref<64x128xbf16, #tpu.memory_space<vmem>>, vector<64x128xbf16>
    %cst_57 = arith.constant dense<0.000000e+00> : vector<8x128xf32>
    %228 = tpu.matmul %226, %227, %cst_57 {dimension_numbers = #tpu.dot_dimension_numbers<[1], [0], [0], [1], [0, 0, 1, 1], [], []>} : vector<8x64xbf16>, vector<64x128xbf16>, vector<8x128xf32> -> vector<8x128xf32>
    %c0_58 = arith.constant 0 : index
    %c0_59 = arith.constant 0 : index
    %229 = vector.load %arg5[%c0_58, %c0_59] : memref<1x128xf32, #tpu.memory_space<vmem>>, vector<1x128xf32>
    %230 = vector.broadcast %229 : vector<1x128xf32> to vector<8x128xf32>
    %231 = arith.addf %228, %230 : vector<8x128xf32>
    %c0_60 = arith.constant 0 : index
    %c0_61 = arith.constant 0 : index
    %232 = vector.load %arg6[%c0_60, %c0_61] : memref<8x128xf32, #tpu.memory_space<vmem>>, vector<8x128xf32>
    tpu.vector_store %arg6[%c0_60, %c0_61], %231 {strides = array<i32>} : memref<8x128xf32, #tpu.memory_space<vmem>>, vector<8x128xf32>,
    return
  }
}

</mosaic_0001>

<bundles_post_ra>
// kernel: lstm_forward.1
= control target key start
LH: loop header
LB: loop body
LE: loop exit
PB: predicated region body
PF: predicated region fallthrough
CT: control target
= control target key end

     0   :  { %11 = vsyncpa [#allocation4], 0  ;;  %s1898_s21 = smov [#allocation3]   ;;  %s2563_s0 = inlined_call_operand.vmem [shape: f32[64,4], index: 0, kind: input, shape index: {}]   ;;  %s2564_s1 = inlined_call_operand.vmem [shape: bf16[4,512], index: 1, kind: input, shape index: {}]   ;;  %s2565_s2 = inlined_call_operand.vmem [shape: f32[1,512], index: 2, kind: input, shape index: {}]   ;;  %s2566_s3 = inlined_call_operand.hbm [shape: bf16[128,512], index: 3, kind: input, shape index: {}]   ;;  %s2567_s4 = inlined_call_operand.vmem [shape: bf16[64,128], index: 4, kind: input, shape index: {}]   ;;  %s2568_s5 = inlined_call_operand.vmem [shape: f32[1,128], index: 5, kind: input, shape index: {}]   ;;  %s2569_s6 = inlined_call_operand.vmem [shape: f32[8,128], index: 6, kind: output, shape index: {}]  }
   0x1   :  { %s23_s22 = sshll.u32 %s1898_s21, 4  ;;  %s24_s22 = int_to_ptr.vmem [resolvable:$true] %s23_s22 }
   0x2   :  { %s1884_s23 = scalar_lea.vmem %s24_s22, 4096  ;;  %p1889_p1 = scmp.lt.s32.totalorder %s24_s22, %s24_s22 }
   0x3   :  { %p1885_p0 = scmp.ne.s32.totalorder %s24_s22, %s1884_s23  ;;  %p1890_p2 = scmp.lt.s32.totalorder %s1884_s23, %s1884_s23 }
   0x5   :  { %p1891_p3 = por %p1890_p2, %p1889_p1 }
   0x7   :  { %p1892_p4 = pnand %p1891_p3, %p1885_p0 }
   0x9   :  { %1895 = shalt.err (!%p1892_p4)
}
   0xa   :  { %s1899_s24 = smov 256   ;;  %s1900_s25 = smov 16  }
   0xb   :  { %29 = dma.hbm_to_vmem [thread:$0]  %s2566_s3, 4096, %s24_s22, [#allocation4], %s1899_s24, %s1899_s24, %s1900_s25  }
   0xc   :  { %1896 = dma.done.wait [#allocation4], 4096  }
   0xd   :  { %1897 = vsyncadd [#allocation4], 4294963200  ;;  %v53_v0 = vlaneseq  ;;  %v1901_v1 = vmov 1983009808   ;;  %v2575_v3 = vmov 0   ;;  %v50_v7 = vld [vmem:[%s2564_s1] sm:$0xff] }
   0xe   :  { %v76_v2 = vunpack.c.l.s4 %v1901_v1  ;;  %149 = vmatprep.mubr.bf16.mxu0 %v2575_v3  ;;  %222 = vmatprep.mubr.bf16.mxu1 %v2575_v3  ;;  %vm104_vm0 = vcmask 1041408   ;;  %v38_v8 = vld [vmem:[%s2563_s0] sm:$0xff]  ;;  %v39_v10 = vld [vmem:[%s2563_s0 + $0x8] sm:$0xff]  ;;  %v74_v11 = vcombine.high %v50_v7, %v50_v7  ;;  %vm91_vm1 = vcmask 31744   ;;  %v40_v22 = vld [vmem:[%s2563_s0 + $0x10] sm:$0xff] }
   0xf   :  { %v1947_v4 = vshrl.u32 %v53_v0, 7  ;;  %v46_v15 = vpack.c.bf16 %v39_v10, %v38_v8  ;;  %v1963_v18 = vld [vmem:[#allocation3 + $0xe4] ss:$16 sps:$4 sm:$0xff]   ;;  %v1965_v19 = vld [vmem:[#allocation3 + $0xec] ss:$16 sps:$4 sm:$0xff]   ;;  %vm1904_vm3 = vmmov 0  }
  0x10   :  { %v77_v5 = vunpack.c.0.s8 %v76_v2  ;;  %v1967_v20 = vld [vmem:[#allocation3 + $0xe0] ss:$16 sps:$4 sm:$0xff]   ;;  %v1969_v21 = vld [vmem:[#allocation3 + $0xe8] ss:$16 sps:$4 sm:$0xff]   ;;  %v1981_v25 = vld [vmem:[#allocation3 + $0xc4] ss:$16 sps:$4 sm:$0xff]  }
  0x11   :  { %2580 = vst [vmem:[#allocation6_spill] sm:$0xff] %v1947_v4  ;;  %v41_v23 = vld [vmem:[%s2563_s0 + $0x18] sm:$0xff]  ;;  %v1986_v27 = vld [vmem:[#allocation3 + $0xc0] ss:$16 sps:$4 sm:$0xff]   ;;  %v1995_v29 = vld [vmem:[#allocation3 + $0xa4] ss:$16 sps:$4 sm:$0xff]  }
  0x12   :  { %v80_v6 = vsub.s32 %v77_v5, %v1947_v4  ;;  %v47_v24 = vpack.c.bf16 %v41_v23, %v40_v22  ;;  %v1983_v26 = vld [vmem:[#allocation3 + $0xcc] ss:$16 sps:$4 sm:$0xff]   ;;  %v1988_v28 = vld [vmem:[#allocation3 + $0xc8] ss:$16 sps:$4 sm:$0xff]   ;;  %v2001_v31 = vld [vmem:[#allocation3 + $0xa0] ss:$16 sps:$4 sm:$0xff]  }
  0x13   :  { %v1997_v30 = vld [vmem:[#allocation3 + $0xac] ss:$16 sps:$4 sm:$0xff]   ;;  %v2003_v32 = vld [vmem:[#allocation3 + $0xa8] ss:$16 sps:$4 sm:$0xff]   ;;  %v42_v33 = vld [vmem:[%s2563_s0 + $0x20] sm:$0xff]  ;;  %v2572_v59 = vsub.s32 0, %v1947_v4 }
  0x14   :  { %v81_v9 = vrot.slane %v50_v7, %v80_v6  ;;  %v88_v14 = vrot.slane %v74_v11, %v80_v6  ;;  %v43_v34 = vld [vmem:[%s2563_s0 + $0x28] sm:$0xff]  ;;  %v2015_v36 = vld [vmem:[#allocation3 + $0x84] ss:$16 sps:$4 sm:$0xff]   ;;  %v2020_v38 = vld [vmem:[#allocation3 + $0x80] ss:$16 sps:$4 sm:$0xff]   ;;  %v2571_v1 = vsub.s32 2, %v1947_v4 }
  0x15   :  { %v48_v35 = vpack.c.bf16 %v43_v34, %v42_v33  ;;  %v2017_v37 = vld [vmem:[#allocation3 + $0x8c] ss:$16 sps:$4 sm:$0xff]   ;;  %v2022_v39 = vld [vmem:[#allocation3 + $0x88] ss:$16 sps:$4 sm:$0xff]   ;;  %v2029_v40 = vld [vmem:[#allocation3 + $0x64] ss:$16 sps:$4 sm:$0xff]  }
  0x16   :  { %v89_v12 = vcombine.high %v81_v9, %v81_v9  ;;  %v106_v13 = vsel %vm104_vm0, %v81_v9, 0  ;;  %v90_v16 = vcombine.high %v88_v14, %v88_v14  ;;  %v112_v17 = vsel %vm104_vm0, %v88_v14, 0  ;;  %v2031_v41 = vld [vmem:[#allocation3 + $0x60] ss:$16 sps:$4 sm:$0xff]   ;;  %v2033_v42 = vld [vmem:[#allocation3 + $0x6c] ss:$16 sps:$4 sm:$0xff]  }
  0x17   :  { %v2037_v43 = vld [vmem:[#allocation3 + $0x68] ss:$16 sps:$4 sm:$0xff]   ;;  %v44_v44 = vld [vmem:[%s2563_s0 + $0x30] sm:$0xff]  ;;  %v2049_v48 = vld [vmem:[#allocation3 + $0x4c] ss:$16 sps:$4 sm:$0xff]   ;;  %v2570_v7 = vsub.s32 3, %v1947_v4 }
  0x18   :  { %1551 = vmatprep.subr.msk.bf16.mxu0 %vm104_vm0, %v89_v12  ;;  %1556 = vmatprep.subr.msk.bf16.mxu1 %vm104_vm0, %v90_v16  ;;  %v45_v45 = vld [vmem:[%s2563_s0 + $0x38] sm:$0xff]  ;;  %v2047_v47 = vld [vmem:[#allocation3 + $0x44] ss:$16 sps:$4 sm:$0xff]   ;;  %v2053_v49 = vld [vmem:[#allocation3 + $0x40] ss:$16 sps:$4 sm:$0xff]   ;;  %v354_v16 = vand.u32 127, %v53_v0 }
  0x19   :  { %132 = vmatpush1.bf16.msra.mxu0 %v106_v13  ;;  %205 = vmatpush1.bf16.msra.mxu1 %v112_v17  ;;  %v49_v46 = vpack.c.bf16 %v45_v45, %v44_v44  ;;  %v2055_v50 = vld [vmem:[#allocation3 + $0x48] ss:$16 sps:$4 sm:$0xff]   ;;  %v2059_v51 = vld [vmem:[#allocation3 + $0x24] ss:$16 sps:$4 sm:$0xff]   ;;  %v2061_v52 = vld [vmem:[#allocation3 + $0x2c] ss:$16 sps:$4 sm:$0xff]  }
  0x1a   :  { %546 = vmatprep.subr.bf16.mxu0 %v1963_v18  ;;  %587 = vmatprep.subr.bf16.mxu1 %v1965_v19  ;;  %v2069_v53 = vld [vmem:[#allocation3 + $0x20] ss:$16 sps:$4 sm:$0xff]   ;;  %v2071_v54 = vld [vmem:[#allocation3 + $0x28] ss:$16 sps:$4 sm:$0xff]   ;;  %v2075_v55 = vld [vmem:[#allocation3 + $0x4] ss:$16 sps:$4 sm:$0xff]  }
  0x1b   :  { %v2077_v56 = vld [vmem:[#allocation3 + $0xc] ss:$16 sps:$4 sm:$0xff]   ;;  %v2081_v57 = vld [vmem:[#allocation3] ss:$16 sps:$4 sm:$0xff]   ;;  %v2083_v58 = vld [vmem:[#allocation3 + $0x8] ss:$16 sps:$4 sm:$0xff]  }
  0x1c   :  { %1552 = vmatmul.mubr.msk.bf16.vlgmr.msra.gmra.mxu0 %vm91_vm1, %v46_v15  ;;  %1557 = vmatmul.mubr.msk.bf16.vlgmr.msra.gmra.mxu1 %vm91_vm1, %v46_v15  ;;  %v2095_v60 = vld [vmem:[%s2565_s2] sm:$0xf]  ;;  %vm355_vm2 = vcmp.lt.s32.totalorder %v354_v16, 64  ;;  %v2573_v33 = vmov 0.0   ;;  %vm1493_vm4 = vcmask 523264  }
  0x1d   :  { %159 = vmatprep.mubr.bf16.mxu0 %v2575_v3  ;;  %232 = vmatprep.mubr.bf16.mxu1 %v2575_v3  ;;  %v2100_v61 = vrot.slane %v2095_v60, %v2572_v59  ;;  %v2107_v6 = vrot.slane %v2095_v60, %v2571_v1  ;;  %v2114_v10 = vrot.slane %v2095_v60, %v2570_v7  ;;  %v1561_v34 = vsel %vm355_vm2, 1.0, %v2573_v33 }
  0x1e   :  { %547 = vmatpush1.bf16.msra.mxu0 %v1967_v20  ;;  %588 = vmatpush1.bf16.msra.mxu1 %v1969_v21 }
  0x1f   :  { %548 = vmatprep.subr.bf16.mxu0 %v1981_v25  ;;  %589 = vmatprep.subr.bf16.mxu1 %v1983_v26 }
  0x22   :  { %549 = vmatpush1.bf16.msra.mxu0 %v1986_v27  ;;  %590 = vmatpush1.bf16.msra.mxu1 %v1988_v28 }
  0x23   :  { %550 = vmatprep.subr.bf16.mxu0 %v1995_v29  ;;  %591 = vmatprep.subr.bf16.mxu1 %v1997_v30 }
  0x24   :  { %1553 = vmatmul.mubr.msk.bf16.gmra.mxu0 %vm91_vm1, %v47_v24  ;;  %1558 = vmatmul.mubr.msk.bf16.gmra.mxu1 %vm91_vm1, %v47_v24 }
  0x25   :  { %169 = vmatprep.mubr.bf16.mxu0 %v2575_v3  ;;  %242 = vmatprep.mubr.bf16.mxu1 %v2575_v3 }
  0x26   :  { %551 = vmatpush1.bf16.msra.mxu0 %v2001_v31  ;;  %592 = vmatpush1.bf16.msra.mxu1 %v2003_v32 }
  0x27   :  { %552 = vmatprep.subr.bf16.mxu0 %v2015_v36  ;;  %593 = vmatprep.subr.bf16.mxu1 %v2017_v37 }
  0x2a   :  { %553 = vmatpush1.bf16.msra.mxu0 %v2020_v38  ;;  %594 = vmatpush1.bf16.msra.mxu1 %v2022_v39 }
  0x2b   :  { %554 = vmatprep.subr.bf16.mxu0 %v2029_v40  ;;  %595 = vmatprep.subr.bf16.mxu1 %v2033_v42 }
  0x2c   :  { %1554 = vmatmul.mubr.msk.bf16.gmra.mxu0 %vm91_vm1, %v48_v35  ;;  %1559 = vmatmul.mubr.msk.bf16.gmra.mxu1 %vm91_vm1, %v48_v35 }
  0x2d   :  { %179 = vmatprep.mubr.bf16.mxu0 %v2575_v3  ;;  %252 = vmatprep.mubr.bf16.mxu1 %v2575_v3 }
  0x2e   :  { %555 = vmatpush1.bf16.msra.mxu0 %v2031_v41  ;;  %596 = vmatpush1.bf16.msra.mxu1 %v2037_v43 }
  0x2f   :  { %556 = vmatprep.subr.bf16.mxu0 %v2047_v47  ;;  %597 = vmatprep.subr.bf16.mxu1 %v2049_v48 }
  0x32   :  { %557 = vmatpush1.bf16.msra.mxu0 %v2053_v49  ;;  %598 = vmatpush1.bf16.msra.mxu1 %v2055_v50 }
  0x33   :  { %558 = vmatprep.subr.bf16.mxu0 %v2059_v51  ;;  %599 = vmatprep.subr.bf16.mxu1 %v2061_v52 }
  0x34   :  { %1555 = vmatmul.mubr.msk.bf16.gmra.mxu0 %vm91_vm1, %v49_v46  ;;  %1560 = vmatmul.mubr.msk.bf16.gmra.mxu1 %vm91_vm1, %v49_v46 }
  0x35   :  { %578 = vmatprep.mubr.bf16.mxu0 %v2575_v3  ;;  %619 = vmatprep.mubr.bf16.mxu1 %v2575_v3 }
  0x36   :  { %559 = vmatpush1.bf16.msra.mxu0 %v2069_v53  ;;  %600 = vmatpush1.bf16.msra.mxu1 %v2071_v54 }
  0x37   :  { %560 = vmatprep.subr.bf16.mxu0 %v2075_v55  ;;  %601 = vmatprep.subr.bf16.mxu1 %v2077_v56 }
  0x3a   :  { %561 = vmatpush1.bf16.msra.mxu0 %v2081_v57  ;;  %602 = vmatpush1.bf16.msra.mxu1 %v2083_v58 }
  0x3b   :  { %660 = vmatprep.subr.bf16.mxu0 %v1963_v18  ;;  %701 = vmatprep.subr.bf16.mxu1 %v1965_v19 }
  0xdc   :  { %v151_v62 = vpop.f32.mrf.mxu0  ;;  %v224_v8 = vpop.f32.mrf.mxu1 }
  0xdd   :  { %v152_v63 = vadd.f32 %v151_v62, %v2100_v61  ;;  %v225_v9 = vadd.f32 %v224_v8, %v2107_v6 }
  0xde   :  { %v153_v2 = vpop.f32.mrf.mxu0  ;;  %v226_v12 = vpop.f32.mrf.mxu1 }
  0xdf   :  { %v1562_v5 = vmul.f32 -1.442695, %v152_v63  ;;  %v1563_v11 = vmul.f32 -1.442695, %v225_v9  ;;  %v227_v13 = vadd.f32 %v226_v12, %v2114_v10 }
  0xe0   :  { %v228_v0 = vpop.f32.mrf.mxu1  ;;  %v155_v2 = vpop.f32.mrf.mxu0 }
  0xe1   :  { %1704 = vpow2.f32 %v1562_v5 }
  0xe2   :  { %1706 = vpow2.f32 %v1563_v11  ;;  %v230_v5 = vpop.f32.mrf.mxu1  ;;  %v157_v8 = vpop.f32.mrf.mxu0 }
  0xe3   :  { %1708 = vtanh.f32 %v227_v13 }
  0xe4   :  { %v2156_v9 = vpop.f32.mrf.mxu1  ;;  %v2158_v11 = vpop.f32.mrf.mxu0 }
  0xe6   :  { %v2160_v12 = vpop.f32.mrf.mxu1  ;;  %v2162_v13 = vpop.f32.mrf.mxu0 }
  0xee   :  { %v1705_v14 = vpop.eup %1704 }
  0xef   :  { %v367_v15 = vadd.f32 1.0, %v1705_v14  ;;  %v1707_v17 = vpop.eup %1706  ;;  %v2164_v14 = vpop.f32.mrf.mxu1 }
  0xf0   :  { %v1709_v22 = vpop.eup %1708  ;;  %v368_v24 = vadd.f32 1.0, %v1707_v17  ;;  %2581 = vst [vmem:[#allocation7_spill] sm:$0xff] %v2164_v14 }
  0xf1   :  { %1710 = vrcp.f32 %v367_v15  ;;  %v2166_v15 = vpop.f32.mrf.mxu0  ;;  %v2168_v16 = vpop.f32.mrf.mxu1 }
  0xf2   :  { %1712 = vrcp.f32 %v368_v24  ;;  %2582 = vst [vmem:[#allocation8_spill] sm:$0xff] %v2168_v16 }
  0xf3   :  { %v2170_v17 = vpop.f32.mrf.mxu0 }
  0xf4   :  { %2583 = vst [vmem:[#allocation9_spill] sm:$0xff] %v2170_v17 }
  0xfe   :  { %v1711_v23 = vpop.eup %1710 }
  0xff   :  { %v374_v35 = vmul.f32 %v1711_v23, %v1709_v22  ;;  %v1713_v45 = vpop.eup %1712  ;;  %v2172_v22 = vpop.f32.mrf.mxu1 }
 0x100   :  { %2584 = vst [vmem:[#allocation10_spill] sm:$0xff] %v2172_v22  ;;  %v2174_v23 = vpop.f32.mrf.mxu0 }
 0x101   :  { %v2119_v44 = vmul.f32 %v1561_v34, %v374_v35  ;;  %2585 = vst [vmem:[#allocation11_spill] sm:$0xff] %v2174_v23  ;;  %v2176_v24 = vpop.f32.mrf.mxu1 }
 0x102   :  { %2586 = vst [vmem:[#allocation12_spill] sm:$0xff] %v2176_v24  ;;  %v2178_v34 = vpop.f32.mrf.mxu0 }
 0x103   :  { %1714 = vtanh.f32 %v2119_v44  ;;  %2587 = vst [vmem:[#allocation13_spill] sm:$0xff] %v2178_v34  ;;  %v2180_v35 = vpop.f32.mrf.mxu1 }
 0x104   :  { %2588 = vst [vmem:[#allocation14_spill] sm:$0xff] %v2180_v35 }
 0x110   :  { %v1715_v46 = vpop.eup %1714 }
 0x111   :  { %v377_v62 = vmul.f32 %v1715_v46, %v1713_v45  ;;  %v2182_v45 = vpop.f32.mrf.mxu0  ;;  %v2184_v46 = vpop.f32.mrf.mxu1 }
 0x112   :  { %2589 = vst [vmem:[#allocation15_spill] sm:$0xff] %v2182_v45  ;;  %2590 = vst [vmem:[#allocation16_spill] sm:$0xff] %v2184_v46 }
 0x113   :  { %v378_v63 = vpack.c.bf16 %v377_v62, %v377_v62  ;;  %v2186_v62 = vpop.f32.mrf.mxu0 }
 0x114   :  { %2591 = vst [vmem:[#allocation17_spill] sm:$0xff] %v2186_v62 }
 0x115   :  { %579 = vmatmul.mubr.bf16.vlgmr.msra.gmra.mxu0 %v378_v63  ;;  %620 = vmatmul.mubr.bf16.vlgmr.msra.gmra.mxu1 %v378_v63  ;;  %v2188_v63 = vpop.f32.mrf.mxu1  ;;  %v2190_v7 = vpop.f32.mrf.mxu0 }
 0x116   :  { %661 = vmatpush1.bf16.msra.mxu0 %v1967_v20  ;;  %702 = vmatpush1.bf16.msra.mxu1 %v1969_v21  ;;  %2592 = vst [vmem:[#allocation18_spill] sm:$0xff] %v2188_v63  ;;  %2593 = vst [vmem:[#allocation19_spill] sm:$0xff] %v2190_v7  ;;  %v156_v7 = vadd.f32 %v155_v2, %v2100_v61  ;;  %v231_v2 = vadd.f32 %v230_v5, %v2114_v10 }
 0x117   :  { %662 = vmatprep.subr.bf16.mxu0 %v1981_v25  ;;  %703 = vmatprep.subr.bf16.mxu1 %v1983_v26  ;;  %v2192_v1 = vpop.f32.mrf.mxu1  ;;  %v2194_v59 = vpop.f32.mrf.mxu0 }
 0x118   :  { %692 = vmatprep.mubr.bf16.mxu0 %v2575_v3  ;;  %733 = vmatprep.mubr.bf16.mxu1 %v2575_v3  ;;  %2594 = vst [vmem:[#allocation20_spill] sm:$0xff] %v2192_v1  ;;  %2595 = vst [vmem:[#allocation21_spill] sm:$0xff] %v2194_v59  ;;  %v2579_v3 = vsub.s32 1, %v1947_v4 }
 0x119   :  { %v2196_v33 = vpop.f32.mrf.mxu1  ;;  %v2199_v24 = vpop.f32.mrf.mxu0 }
 0x11a   :  { %663 = vmatpush1.bf16.msra.mxu0 %v1986_v27  ;;  %704 = vmatpush1.bf16.msra.mxu1 %v1988_v28  ;;  %2596 = vst [vmem:[#allocation22_spill] sm:$0xff] %v2196_v33  ;;  %2597 = vst [vmem:[#allocation23_spill] sm:$0xff] %v2199_v24  ;;  %v2206_v46 = vrot.slane %v2095_v60, %v2579_v3  ;;  %v229_v3 = vadd.f32 %v228_v0, %v2107_v6 }
 0x11b   :  { %664 = vmatprep.subr.bf16.mxu0 %v1995_v29  ;;  %705 = vmatprep.subr.bf16.mxu1 %v1997_v30  ;;  %v2201_v35 = vpop.f32.mrf.mxu1  ;;  %v2208_v63 = vpop.f32.mrf.mxu0 }
 0x11c   :  { %2598 = vst [vmem:[#allocation24_spill] sm:$0xff] %v2201_v35  ;;  %2599 = vst [vmem:[#allocation25_spill] sm:$0xff] %v2208_v63  ;;  %v158_v59 = vadd.f32 %v157_v8, %v2206_v46 }
 0x11e   :  { %665 = vmatpush1.bf16.msra.mxu0 %v2001_v31  ;;  %706 = vmatpush1.bf16.msra.mxu1 %v2003_v32 }
 0x11f   :  { %666 = vmatprep.subr.bf16.mxu0 %v2015_v36  ;;  %707 = vmatprep.subr.bf16.mxu1 %v2017_v37 }
 0x122   :  { %667 = vmatpush1.bf16.msra.mxu0 %v2020_v38  ;;  %708 = vmatpush1.bf16.msra.mxu1 %v2022_v39 }
 0x123   :  { %668 = vmatprep.subr.bf16.mxu0 %v2029_v40  ;;  %709 = vmatprep.subr.bf16.mxu1 %v2033_v42 }
 0x126   :  { %669 = vmatpush1.bf16.msra.mxu0 %v2031_v41  ;;  %710 = vmatpush1.bf16.msra.mxu1 %v2037_v43 }
 0x127   :  { %670 = vmatprep.subr.bf16.mxu0 %v2047_v47  ;;  %711 = vmatprep.subr.bf16.mxu1 %v2049_v48 }
 0x12a   :  { %671 = vmatpush1.bf16.msra.mxu0 %v2053_v49  ;;  %712 = vmatpush1.bf16.msra.mxu1 %v2055_v50 }
 0x12b   :  { %672 = vmatprep.subr.bf16.mxu0 %v2059_v51  ;;  %713 = vmatprep.subr.bf16.mxu1 %v2061_v52 }
 0x12e   :  { %673 = vmatpush1.bf16.msra.mxu0 %v2069_v53  ;;  %714 = vmatpush1.bf16.msra.mxu1 %v2071_v54 }
 0x12f   :  { %674 = vmatprep.subr.bf16.mxu0 %v2075_v55  ;;  %715 = vmatprep.subr.bf16.mxu1 %v2077_v56 }
 0x132   :  { %675 = vmatpush1.bf16.msra.mxu0 %v2081_v57  ;;  %716 = vmatpush1.bf16.msra.mxu1 %v2083_v58 }
 0x133   :  { %774 = vmatprep.subr.bf16.mxu0 %v1963_v18  ;;  %815 = vmatprep.subr.bf16.mxu1 %v1965_v19 }
 0x1d5   :  { %v580_v1 = vpop.f32.mrf.mxu0  ;;  %v621_v62 = vpop.f32.mrf.mxu1 }
 0x1d6   :  { %v581_v33 = vadd.f32 %v580_v1, %v156_v7  ;;  %v622_v63 = vadd.f32 %v621_v62, %v229_v3 }
 0x1d7   :  { %v582_v45 = vpop.f32.mrf.mxu0  ;;  %v623_v22 = vpop.f32.mrf.mxu1 }
 0x1d8   :  { %v1596_v34 = vmul.f32 -1.442695, %v581_v33  ;;  %v583_v24 = vadd.f32 %v582_v45, %v158_v59  ;;  %v1598_v14 = vmul.f32 -1.442695, %v622_v63  ;;  %v624_v8 = vadd.f32 %v623_v22, %v231_v2 }
 0x1d9   :  { %v584_v23 = vpop.f32.mrf.mxu0  ;;  %v625_v35 = vpop.f32.mrf.mxu1  ;;  %v164_v63 = vadd.f32 %v2162_v13, %v2206_v46 }
 0x1da   :  { %1716 = vpow2.f32 %v1596_v34  ;;  %v1597_v4 = vmul.f32 -1.442695, %v583_v24  ;;  %v162_v35 = vadd.f32 %v2158_v11, %v2100_v61  ;;  %v235_v11 = vadd.f32 %v2156_v9, %v2107_v6 }
 0x1db   :  { %v585_v16 = vpop.f32.mrf.mxu0  ;;  %v626_v60 = vpop.f32.mrf.mxu1 }
 0x1dc   :  { %1718 = vpow2.f32 %v1597_v4 }
 0x1dd   :  { %1720 = vpow2.f32 %v1598_v14 }
 0x1e7   :  { %v1717_v17 = vpop.eup %1716 }
 0x1e8   :  { %v637_v1 = vadd.f32 1.0, %v1717_v17 }
 0x1e9   :  { %v1719_v7 = vpop.eup %1718 }
 0x1ea   :  { %1722 = vrcp.f32 %v637_v1  ;;  %v638_v59 = vadd.f32 1.0, %v1719_v7  ;;  %v1721_v33 = vpop.eup %1720 }
 0x1eb   :  { %1724 = vtanh.f32 %v624_v8  ;;  %v639_v4 = vadd.f32 1.0, %v1721_v33 }
 0x1ec   :  { %1726 = vrcp.f32 %v638_v59 }
 0x1ed   :  { %1728 = vrcp.f32 %v639_v4 }
 0x1f7   :  { %v1723_v23 = vpop.eup %1722 }
 0x1f8   :  { %v1725_v16 = vpop.eup %1724 }
 0x1f9   :  { %v1727_v24 = vpop.eup %1726  ;;  %v648_v3 = vmul.f32 %v1725_v16, %v1723_v23 }
 0x1fa   :  { %v647_v0 = vmul.f32 %v1727_v24, %v2119_v44  ;;  %v1729_v5 = vpop.eup %1728  ;;  %v2600_v44 = vmov 0  }
 0x1fc   :  { %v2215_v34 = vadd.f32 %v648_v3, %v647_v0  ;;  %v237_v0 = vadd.f32 %v2160_v12, %v2114_v10 }
 0x1fe   :  { %1730 = vtanh.f32 %v2215_v34 }
 0x20b   :  { %v1731_v17 = vpop.eup %1730 }
 0x20c   :  { %v651_v14 = vmul.f32 %v1731_v17, %v1729_v5 }
 0x20e   :  { %v652_v22 = vpack.c.bf16 %v651_v14, %v651_v14 }
 0x210   :  { %693 = vmatmul.mubr.bf16.vlgmr.msra.gmra.mxu0 %v652_v22  ;;  %734 = vmatmul.mubr.bf16.vlgmr.msra.gmra.mxu1 %v652_v22 }
 0x211   :  { %775 = vmatpush1.bf16.msra.mxu0 %v1967_v20  ;;  %816 = vmatpush1.bf16.msra.mxu1 %v1969_v21 }
 0x212   :  { %776 = vmatprep.subr.bf16.mxu0 %v1981_v25  ;;  %817 = vmatprep.subr.bf16.mxu1 %v1983_v26 }
 0x213   :  { %806 = vmatprep.mubr.bf16.mxu0 %v2600_v44  ;;  %847 = vmatprep.mubr.bf16.mxu1 %v2600_v44 }
 0x215   :  { %777 = vmatpush1.bf16.msra.mxu0 %v1986_v27  ;;  %818 = vmatpush1.bf16.msra.mxu1 %v1988_v28 }
 0x216   :  { %778 = vmatprep.subr.bf16.mxu0 %v1995_v29  ;;  %819 = vmatprep.subr.bf16.mxu1 %v1997_v30 }
 0x219   :  { %779 = vmatpush1.bf16.msra.mxu0 %v2001_v31  ;;  %820 = vmatpush1.bf16.msra.mxu1 %v2003_v32 }
 0x21a   :  { %780 = vmatprep.subr.bf16.mxu0 %v2015_v36  ;;  %821 = vmatprep.subr.bf16.mxu1 %v2017_v37 }
 0x21d   :  { %781 = vmatpush1.bf16.msra.mxu0 %v2020_v38  ;;  %822 = vmatpush1.bf16.msra.mxu1 %v2022_v39 }
 0x21e   :  { %782 = vmatprep.subr.bf16.mxu0 %v2029_v40  ;;  %823 = vmatprep.subr.bf16.mxu1 %v2033_v42 }
 0x221   :  { %783 = vmatpush1.bf16.msra.mxu0 %v2031_v41  ;;  %824 = vmatpush1.bf16.msra.mxu1 %v2037_v43 }
 0x222   :  { %784 = vmatprep.subr.bf16.mxu0 %v2047_v47  ;;  %825 = vmatprep.subr.bf16.mxu1 %v2049_v48 }
 0x225   :  { %785 = vmatpush1.bf16.msra.mxu0 %v2053_v49  ;;  %826 = vmatpush1.bf16.msra.mxu1 %v2055_v50 }
 0x226   :  { %786 = vmatprep.subr.bf16.mxu0 %v2059_v51  ;;  %827 = vmatprep.subr.bf16.mxu1 %v2061_v52 }
 0x229   :  { %787 = vmatpush1.bf16.msra.mxu0 %v2069_v53  ;;  %828 = vmatpush1.bf16.msra.mxu1 %v2071_v54 }
 0x22a   :  { %788 = vmatprep.subr.bf16.mxu0 %v2075_v55  ;;  %829 = vmatprep.subr.bf16.mxu1 %v2077_v56 }
 0x22d   :  { %789 = vmatpush1.bf16.msra.mxu0 %v2081_v57  ;;  %830 = vmatpush1.bf16.msra.mxu1 %v2083_v58 }
 0x22e   :  { %888 = vmatprep.subr.bf16.mxu0 %v1963_v18  ;;  %929 = vmatprep.subr.bf16.mxu1 %v1965_v19 }
 0x2d0   :  { %v694_v45 = vpop.f32.mrf.mxu0  ;;  %v735_v62 = vpop.f32.mrf.mxu1 }
 0x2d1   :  { %v695_v60 = vadd.f32 %v694_v45, %v162_v35  ;;  %v736_v4 = vadd.f32 %v735_v62, %v235_v11 }
 0x2d2   :  { %v696_v2 = vpop.f32.mrf.mxu0  ;;  %v737_v8 = vpop.f32.mrf.mxu1 }
 0x2d3   :  { %v1599_v1 = vmul.f32 -1.442695, %v695_v60  ;;  %v697_v7 = vadd.f32 %v696_v2, %v164_v63  ;;  %v1601_v13 = vmul.f32 -1.442695, %v736_v4  ;;  %v738_v3 = vadd.f32 %v737_v8, %v237_v0 }
 0x2d4   :  { %v698_v59 = vpop.f32.mrf.mxu0  ;;  %v739_v33 = vpop.f32.mrf.mxu1 }
 0x2d5   :  { %1732 = vpow2.f32 %v1599_v1  ;;  %v1600_v23 = vmul.f32 -1.442695, %v697_v7 }
 0x2d6   :  { %v699_v16 = vpop.f32.mrf.mxu0  ;;  %v740_v24 = vpop.f32.mrf.mxu1 }
 0x2d7   :  { %1734 = vpow2.f32 %v1600_v23  ;;  %v2601_v16 = vld [vmem:[#allocation9_spill] sm:$0xff] }
 0x2d8   :  { %1736 = vpow2.f32 %v1601_v13  ;;  %v168_v24 = vadd.f32 %v2601_v16, %v2206_v46 }
 0x2d9   :  { %1738 = vtanh.f32 %v738_v3 }
 0x2e2   :  { %v1733_v5 = vpop.eup %1732 }
 0x2e3   :  { %v751_v17 = vadd.f32 1.0, %v1733_v5 }
 0x2e4   :  { %v1735_v14 = vpop.eup %1734 }
 0x2e5   :  { %1740 = vrcp.f32 %v751_v17  ;;  %v752_v22 = vadd.f32 1.0, %v1735_v14  ;;  %v1737_v35 = vpop.eup %1736 }
 0x2e6   :  { %v1739_v45 = vpop.eup %1738  ;;  %v753_v9 = vadd.f32 1.0, %v1737_v35 }
 0x2e7   :  { %1742 = vrcp.f32 %v752_v22 }
 0x2e8   :  { %1744 = vrcp.f32 %v753_v9 }
 0x2f2   :  { %v1741_v63 = vpop.eup %1740 }
 0x2f3   :  { %v762_v60 = vmul.f32 %v1741_v63, %v1739_v45  ;;  %v2602_v45 = vld [vmem:[#allocation7_spill] sm:$0xff] }
 0x2f4   :  { %v1743_v2 = vpop.eup %1742 }
 0x2f5   :  { %v761_v62 = vmul.f32 %v1743_v2, %v2215_v34  ;;  %v1745_v12 = vpop.eup %1744  ;;  %v166_v34 = vadd.f32 %v2166_v15, %v2100_v61  ;;  %v239_v15 = vadd.f32 %v2602_v45, %v2107_v6  ;;  %v2605_v45 = vld [vmem:[#allocation13_spill] sm:$0xff] }
 0x2f7   :  { %v2261_v1 = vadd.f32 %v762_v60, %v761_v62  ;;  %v2603_v60 = vld [vmem:[#allocation8_spill] sm:$0xff] }
 0x2f8   :  { %v241_v2 = vadd.f32 %v2603_v60, %v2114_v10 }
 0x2f9   :  { %1746 = vtanh.f32 %v2261_v1 }
 0x306   :  { %v1747_v8 = vpop.eup %1746 }
 0x307   :  { %v765_v7 = vmul.f32 %v1747_v8, %v1745_v12 }
 0x309   :  { %v766_v59 = vpack.c.bf16 %v765_v7, %v765_v7 }
 0x30b   :  { %807 = vmatmul.mubr.bf16.vlgmr.msra.gmra.mxu0 %v766_v59  ;;  %848 = vmatmul.mubr.bf16.vlgmr.msra.gmra.mxu1 %v766_v59 }
 0x30c   :  { %889 = vmatpush1.bf16.msra.mxu0 %v1967_v20  ;;  %930 = vmatpush1.bf16.msra.mxu1 %v1969_v21 }
 0x30d   :  { %890 = vmatprep.subr.bf16.mxu0 %v1981_v25  ;;  %931 = vmatprep.subr.bf16.mxu1 %v1983_v26 }
 0x30e   :  { %920 = vmatprep.mubr.bf16.mxu0 %v2600_v44  ;;  %961 = vmatprep.mubr.bf16.mxu1 %v2600_v44 }
 0x310   :  { %891 = vmatpush1.bf16.msra.mxu0 %v1986_v27  ;;  %932 = vmatpush1.bf16.msra.mxu1 %v1988_v28 }
 0x311   :  { %892 = vmatprep.subr.bf16.mxu0 %v1995_v29  ;;  %933 = vmatprep.subr.bf16.mxu1 %v1997_v30 }
 0x314   :  { %893 = vmatpush1.bf16.msra.mxu0 %v2001_v31  ;;  %934 = vmatpush1.bf16.msra.mxu1 %v2003_v32 }
 0x315   :  { %894 = vmatprep.subr.bf16.mxu0 %v2015_v36  ;;  %935 = vmatprep.subr.bf16.mxu1 %v2017_v37 }
 0x318   :  { %895 = vmatpush1.bf16.msra.mxu0 %v2020_v38  ;;  %936 = vmatpush1.bf16.msra.mxu1 %v2022_v39 }
 0x319   :  { %896 = vmatprep.subr.bf16.mxu0 %v2029_v40  ;;  %937 = vmatprep.subr.bf16.mxu1 %v2033_v42 }
 0x31c   :  { %897 = vmatpush1.bf16.msra.mxu0 %v2031_v41  ;;  %938 = vmatpush1.bf16.msra.mxu1 %v2037_v43 }
 0x31d   :  { %898 = vmatprep.subr.bf16.mxu0 %v2047_v47  ;;  %939 = vmatprep.subr.bf16.mxu1 %v2049_v48 }
 0x320   :  { %899 = vmatpush1.bf16.msra.mxu0 %v2053_v49  ;;  %940 = vmatpush1.bf16.msra.mxu1 %v2055_v50 }
 0x321   :  { %900 = vmatprep.subr.bf16.mxu0 %v2059_v51  ;;  %941 = vmatprep.subr.bf16.mxu1 %v2061_v52 }
 0x324   :  { %901 = vmatpush1.bf16.msra.mxu0 %v2069_v53  ;;  %942 = vmatpush1.bf16.msra.mxu1 %v2071_v54 }
 0x325   :  { %902 = vmatprep.subr.bf16.mxu0 %v2075_v55  ;;  %943 = vmatprep.subr.bf16.mxu1 %v2077_v56 }
 0x328   :  { %903 = vmatpush1.bf16.msra.mxu0 %v2081_v57  ;;  %944 = vmatpush1.bf16.msra.mxu1 %v2083_v58 }
 0x329   :  { %1002 = vmatprep.subr.bf16.mxu0 %v1963_v18  ;;  %1043 = vmatprep.subr.bf16.mxu1 %v1965_v19 }
 0x3cb   :  { %v808_v33 = vpop.f32.mrf.mxu0  ;;  %v849_v23 = vpop.f32.mrf.mxu1 }
 0x3cc   :  { %v809_v11 = vadd.f32 %v808_v33, %v166_v34  ;;  %v850_v63 = vadd.f32 %v849_v23, %v239_v15  ;;  %v174_v15 = vadd.f32 %v2605_v45, %v2206_v46 }
 0x3cd   :  { %v810_v4 = vpop.f32.mrf.mxu0  ;;  %v851_v0 = vpop.f32.mrf.mxu1 }
 0x3ce   :  { %v1602_v13 = vmul.f32 -1.442695, %v809_v11  ;;  %v811_v3 = vadd.f32 %v810_v4, %v168_v24  ;;  %v1604_v9 = vmul.f32 -1.442695, %v850_v63  ;;  %v852_v62 = vadd.f32 %v851_v0, %v241_v2 }
 0x3cf   :  { %v812_v5 = vpop.f32.mrf.mxu0  ;;  %v853_v17 = vpop.f32.mrf.mxu1 }
 0x3d0   :  { %1748 = vpow2.f32 %v1602_v13  ;;  %v1603_v14 = vmul.f32 -1.442695, %v811_v3 }
 0x3d1   :  { %v813_v22 = vpop.f32.mrf.mxu0  ;;  %v854_v35 = vpop.f32.mrf.mxu1 }
 0x3d2   :  { %1750 = vpow2.f32 %v1603_v14 }
 0x3d3   :  { %1752 = vpow2.f32 %v1604_v9 }
 0x3d4   :  { %1754 = vtanh.f32 %v852_v62 }
 0x3dd   :  { %v1749_v12 = vpop.eup %1748 }
 0x3de   :  { %v865_v8 = vadd.f32 1.0, %v1749_v12 }
 0x3df   :  { %v1751_v7 = vpop.eup %1750 }
 0x3e0   :  { %1756 = vrcp.f32 %v865_v8  ;;  %v866_v59 = vadd.f32 1.0, %v1751_v7  ;;  %v1753_v34 = vpop.eup %1752 }
 0x3e1   :  { %v1755_v33 = vpop.eup %1754  ;;  %v867_v4 = vadd.f32 1.0, %v1753_v34 }
 0x3e2   :  { %1758 = vrcp.f32 %v866_v59 }
 0x3e3   :  { %1760 = vrcp.f32 %v867_v4 }
 0x3ed   :  { %v1757_v16 = vpop.eup %1756 }
 0x3ee   :  { %v876_v24 = vmul.f32 %v1757_v16, %v1755_v33  ;;  %v2606_v33 = vld [vmem:[#allocation10_spill] sm:$0xff] }
 0x3ef   :  { %v1759_v11 = vpop.eup %1758  ;;  %v245_v16 = vadd.f32 %v2606_v33, %v2107_v6 }
 0x3f0   :  { %v875_v23 = vmul.f32 %v1759_v11, %v2261_v1  ;;  %v1761_v0 = vpop.eup %1760  ;;  %v2604_v1 = vld [vmem:[#allocation11_spill] sm:$0xff]  ;;  %v2607_v11 = vld [vmem:[#allocation12_spill] sm:$0xff] }
 0x3f1   :  { %v172_v14 = vadd.f32 %v2604_v1, %v2100_v61  ;;  %v247_v4 = vadd.f32 %v2607_v11, %v2114_v10 }
 0x3f2   :  { %v2307_v13 = vadd.f32 %v876_v24, %v875_v23 }
 0x3f4   :  { %1762 = vtanh.f32 %v2307_v13 }
 0x401   :  { %v1763_v3 = vpop.eup %1762 }
 0x402   :  { %v879_v5 = vmul.f32 %v1763_v3, %v1761_v0 }
 0x404   :  { %v880_v17 = vpack.c.bf16 %v879_v5, %v879_v5 }
 0x406   :  { %921 = vmatmul.mubr.bf16.vlgmr.msra.gmra.mxu0 %v880_v17  ;;  %962 = vmatmul.mubr.bf16.vlgmr.msra.gmra.mxu1 %v880_v17 }
 0x407   :  { %1003 = vmatpush1.bf16.msra.mxu0 %v1967_v20  ;;  %1044 = vmatpush1.bf16.msra.mxu1 %v1969_v21 }
 0x408   :  { %1004 = vmatprep.subr.bf16.mxu0 %v1981_v25  ;;  %1045 = vmatprep.subr.bf16.mxu1 %v1983_v26 }
 0x409   :  { %1034 = vmatprep.mubr.bf16.mxu0 %v2600_v44  ;;  %1075 = vmatprep.mubr.bf16.mxu1 %v2600_v44 }
 0x40b   :  { %1005 = vmatpush1.bf16.msra.mxu0 %v1986_v27  ;;  %1046 = vmatpush1.bf16.msra.mxu1 %v1988_v28 }
 0x40c   :  { %1006 = vmatprep.subr.bf16.mxu0 %v1995_v29  ;;  %1047 = vmatprep.subr.bf16.mxu1 %v1997_v30 }
 0x40f   :  { %1007 = vmatpush1.bf16.msra.mxu0 %v2001_v31  ;;  %1048 = vmatpush1.bf16.msra.mxu1 %v2003_v32 }
 0x410   :  { %1008 = vmatprep.subr.bf16.mxu0 %v2015_v36  ;;  %1049 = vmatprep.subr.bf16.mxu1 %v2017_v37 }
 0x413   :  { %1009 = vmatpush1.bf16.msra.mxu0 %v2020_v38  ;;  %1050 = vmatpush1.bf16.msra.mxu1 %v2022_v39 }
 0x414   :  { %1010 = vmatprep.subr.bf16.mxu0 %v2029_v40  ;;  %1051 = vmatprep.subr.bf16.mxu1 %v2033_v42 }
 0x417   :  { %1011 = vmatpush1.bf16.msra.mxu0 %v2031_v41  ;;  %1052 = vmatpush1.bf16.msra.mxu1 %v2037_v43 }
 0x418   :  { %1012 = vmatprep.subr.bf16.mxu0 %v2047_v47  ;;  %1053 = vmatprep.subr.bf16.mxu1 %v2049_v48 }
 0x41b   :  { %1013 = vmatpush1.bf16.msra.mxu0 %v2053_v49  ;;  %1054 = vmatpush1.bf16.msra.mxu1 %v2055_v50 }
 0x41c   :  { %1014 = vmatprep.subr.bf16.mxu0 %v2059_v51  ;;  %1055 = vmatprep.subr.bf16.mxu1 %v2061_v52 }
 0x41f   :  { %1015 = vmatpush1.bf16.msra.mxu0 %v2069_v53  ;;  %1056 = vmatpush1.bf16.msra.mxu1 %v2071_v54 }
 0x420   :  { %1016 = vmatprep.subr.bf16.mxu0 %v2075_v55  ;;  %1057 = vmatprep.subr.bf16.mxu1 %v2077_v56 }
 0x423   :  { %1017 = vmatpush1.bf16.msra.mxu0 %v2081_v57  ;;  %1058 = vmatpush1.bf16.msra.mxu1 %v2083_v58 }
 0x424   :  { %1116 = vmatprep.subr.bf16.mxu0 %v1963_v18  ;;  %1157 = vmatprep.subr.bf16.mxu1 %v1965_v19 }
 0x4c6   :  { %v922_v22 = vpop.f32.mrf.mxu0  ;;  %v963_v35 = vpop.f32.mrf.mxu1 }
 0x4c7   :  { %v923_v63 = vadd.f32 %v922_v22, %v172_v14  ;;  %v964_v24 = vadd.f32 %v963_v35, %v245_v16 }
 0x4c8   :  { %v924_v60 = vpop.f32.mrf.mxu0  ;;  %v965_v2 = vpop.f32.mrf.mxu1 }
 0x4c9   :  { %v1605_v9 = vmul.f32 -1.442695, %v923_v63  ;;  %v925_v62 = vadd.f32 %v924_v60, %v174_v15  ;;  %v1607_v23 = vmul.f32 -1.442695, %v964_v24  ;;  %v966_v0 = vadd.f32 %v965_v2, %v247_v4 }
 0x4ca   :  { %v926_v12 = vpop.f32.mrf.mxu0  ;;  %v967_v8 = vpop.f32.mrf.mxu1 }
 0x4cb   :  { %1764 = vpow2.f32 %v1605_v9  ;;  %v1606_v7 = vmul.f32 -1.442695, %v925_v62 }
 0x4cc   :  { %v927_v59 = vpop.f32.mrf.mxu0  ;;  %v968_v34 = vpop.f32.mrf.mxu1 }
 0x4cd   :  { %1766 = vpow2.f32 %v1606_v7 }
 0x4ce   :  { %1768 = vpow2.f32 %v1607_v23 }
 0x4cf   :  { %1770 = vtanh.f32 %v966_v0 }
 0x4d8   :  { %v1765_v3 = vpop.eup %1764 }
 0x4d9   :  { %v979_v5 = vadd.f32 1.0, %v1765_v3 }
 0x4da   :  { %v1767_v17 = vpop.eup %1766 }
 0x4db   :  { %1772 = vrcp.f32 %v979_v5  ;;  %v980_v1 = vadd.f32 1.0, %v1767_v17  ;;  %v1769_v14 = vpop.eup %1768  ;;  %v2402_v17 = vld [vmem:[#allocation3 + $0xe0] ss:$16 sps:$4 sm:$0xff]  }
 0x4dc   :  { %v1771_v22 = vpop.eup %1770  ;;  %v981_v60 = vadd.f32 1.0, %v1769_v14  ;;  %v2408_v14 = vld [vmem:[#allocation3 + $0xc4] ss:$16 sps:$4 sm:$0xff]  }
 0x4dd   :  { %1774 = vrcp.f32 %v980_v1  ;;  %v2405_v1 = vld [vmem:[#allocation3 + $0xe8] ss:$16 sps:$4 sm:$0xff]  }
 0x4de   :  { %1776 = vrcp.f32 %v981_v60  ;;  %v2425_v60 = vld [vmem:[#allocation3 + $0xac] ss:$16 sps:$4 sm:$0xff]  }
 0x4e8   :  { %v1773_v45 = vpop.eup %1772 }
 0x4e9   :  { %v990_v15 = vmul.f32 %v1773_v45, %v1771_v22  ;;  %v2411_v22 = vld [vmem:[#allocation3 + $0xcc] ss:$16 sps:$4 sm:$0xff]   ;;  %v2416_v45 = vld [vmem:[#allocation3 + $0xc0] ss:$16 sps:$4 sm:$0xff]  }
 0x4ea   :  { %v1775_v63 = vpop.eup %1774 }
 0x4eb   :  { %v989_v35 = vmul.f32 %v1775_v63, %v2307_v13  ;;  %v1777_v2 = vpop.eup %1776  ;;  %v2422_v63 = vld [vmem:[#allocation3 + $0xa4] ss:$16 sps:$4 sm:$0xff]  }
 0x4ed   :  { %v2353_v9 = vadd.f32 %v990_v15, %v989_v35  ;;  %v2419_v15 = vld [vmem:[#allocation3 + $0xc8] ss:$16 sps:$4 sm:$0xff]   ;;  %v2428_v35 = vld [vmem:[#allocation3 + $0xa0] ss:$16 sps:$4 sm:$0xff]  }
 0x4ef   :  { %1778 = vtanh.f32 %v2353_v9 }
 0x4fc   :  { %v1779_v62 = vpop.eup %1778 }
 0x4fd   :  { %v993_v12 = vmul.f32 %v1779_v62, %v1777_v2  ;;  %v2434_v2 = vld [vmem:[#allocation3 + $0x84] ss:$16 sps:$4 sm:$0xff]   ;;  %v2437_v62 = vld [vmem:[#allocation3 + $0x8c] ss:$16 sps:$4 sm:$0xff]  }
 0x4ff   :  { %v994_v8 = vpack.c.bf16 %v993_v12, %v993_v12  ;;  %v2440_v12 = vld [vmem:[#allocation3 + $0x80] ss:$16 sps:$4 sm:$0xff]  }
 0x501   :  { %1035 = vmatmul.mubr.bf16.vlgmr.msra.gmra.mxu0 %v994_v8  ;;  %1076 = vmatmul.mubr.bf16.vlgmr.msra.gmra.mxu1 %v994_v8  ;;  %v2443_v8 = vld [vmem:[#allocation3 + $0x88] ss:$16 sps:$4 sm:$0xff]  }
 0x502   :  { %1117 = vmatpush1.bf16.msra.mxu0 %v1967_v20  ;;  %1158 = vmatpush1.bf16.msra.mxu1 %v1969_v21  ;;  %v2608_v20 = vld [vmem:[#allocation15_spill] sm:$0xff] }
 0x503   :  { %1118 = vmatprep.subr.bf16.mxu0 %v1981_v25  ;;  %1159 = vmatprep.subr.bf16.mxu1 %v1983_v26  ;;  %v176_v21 = vadd.f32 %v2608_v20, %v2100_v61  ;;  %v2446_v20 = vld [vmem:[#allocation3 + $0x64] ss:$16 sps:$4 sm:$0xff]  }
 0x504   :  { %1148 = vmatprep.mubr.bf16.mxu0 %v2600_v44  ;;  %1189 = vmatprep.mubr.bf16.mxu1 %v2600_v44 }
 0x506   :  { %1119 = vmatpush1.bf16.msra.mxu0 %v1986_v27  ;;  %1160 = vmatpush1.bf16.msra.mxu1 %v1988_v28  ;;  %v2609_v27 = vld [vmem:[#allocation17_spill] sm:$0xff] }
 0x507   :  { %1120 = vmatprep.subr.bf16.mxu0 %v1995_v29  ;;  %1161 = vmatprep.subr.bf16.mxu1 %v1997_v30  ;;  %v178_v28 = vadd.f32 %v2609_v27, %v2206_v46  ;;  %v2458_v27 = vld [vmem:[#allocation3 + $0x44] ss:$16 sps:$4 sm:$0xff]  }
 0x50a   :  { %1121 = vmatpush1.bf16.msra.mxu0 %v2001_v31  ;;  %1162 = vmatpush1.bf16.msra.mxu1 %v2003_v32 }
 0x50b   :  { %1122 = vmatprep.subr.bf16.mxu0 %v2015_v36  ;;  %1163 = vmatprep.subr.bf16.mxu1 %v2017_v37 }
 0x50e   :  { %1123 = vmatpush1.bf16.msra.mxu0 %v2020_v38  ;;  %1164 = vmatpush1.bf16.msra.mxu1 %v2022_v39 }
 0x50f   :  { %1124 = vmatprep.subr.bf16.mxu0 %v2029_v40  ;;  %1165 = vmatprep.subr.bf16.mxu1 %v2033_v42 }
 0x512   :  { %1125 = vmatpush1.bf16.msra.mxu0 %v2031_v41  ;;  %1166 = vmatpush1.bf16.msra.mxu1 %v2037_v43  ;;  %v2611_v43 = vld [vmem:[#allocation16_spill] sm:$0xff] }
 0x513   :  { %1126 = vmatprep.subr.bf16.mxu0 %v2047_v47  ;;  %1167 = vmatprep.subr.bf16.mxu1 %v2049_v48  ;;  %v251_v47 = vadd.f32 %v2611_v43, %v2114_v10 }
 0x516   :  { %1127 = vmatpush1.bf16.msra.mxu0 %v2053_v49  ;;  %1168 = vmatpush1.bf16.msra.mxu1 %v2055_v50 }
 0x517   :  { %1128 = vmatprep.subr.bf16.mxu0 %v2059_v51  ;;  %1169 = vmatprep.subr.bf16.mxu1 %v2061_v52 }
 0x51a   :  { %1129 = vmatpush1.bf16.msra.mxu0 %v2069_v53  ;;  %1170 = vmatpush1.bf16.msra.mxu1 %v2071_v54 }
 0x51b   :  { %1130 = vmatprep.subr.bf16.mxu0 %v2075_v55  ;;  %1171 = vmatprep.subr.bf16.mxu1 %v2077_v56 }
 0x51e   :  { %1131 = vmatpush1.bf16.msra.mxu0 %v2081_v57  ;;  %1172 = vmatpush1.bf16.msra.mxu1 %v2083_v58 }
 0x51f   :  { %1230 = vmatprep.subr.bf16.mxu0 %v1963_v18  ;;  %1271 = vmatprep.subr.bf16.mxu1 %v1965_v19  ;;  %v2610_v19 = vld [vmem:[#allocation14_spill] sm:$0xff] }
 0x520   :  { %v249_v41 = vadd.f32 %v2610_v19, %v2107_v6 }
 0x5c1   :  { %v1036_v25 = vpop.f32.mrf.mxu0  ;;  %v1077_v26 = vpop.f32.mrf.mxu1 }
 0x5c2   :  { %v1037_v29 = vadd.f32 %v1036_v25, %v176_v21  ;;  %v1078_v42 = vadd.f32 %v1077_v26, %v249_v41  ;;  %v2449_v21 = vld [vmem:[#allocation3 + $0x6c] ss:$16 sps:$4 sm:$0xff]   ;;  %v2452_v25 = vld [vmem:[#allocation3 + $0x60] ss:$16 sps:$4 sm:$0xff]   ;;  %v2455_v26 = vld [vmem:[#allocation3 + $0x68] ss:$16 sps:$4 sm:$0xff]  }
 0x5c3   :  { %v1038_v30 = vpop.f32.mrf.mxu0  ;;  %v1079_v31 = vpop.f32.mrf.mxu1 }
 0x5c4   :  { %v1608_v32 = vmul.f32 -1.442695, %v1037_v29  ;;  %v1039_v36 = vadd.f32 %v1038_v30, %v178_v28  ;;  %v1610_v48 = vmul.f32 -1.442695, %v1078_v42  ;;  %v1080_v49 = vadd.f32 %v1079_v31, %v251_v47  ;;  %v2461_v28 = vld [vmem:[#allocation3 + $0x4c] ss:$16 sps:$4 sm:$0xff]  }
 0x5c5   :  { %v1040_v37 = vpop.f32.mrf.mxu0  ;;  %v1081_v38 = vpop.f32.mrf.mxu1  ;;  %v2464_v29 = vld [vmem:[#allocation3 + $0x40] ss:$16 sps:$4 sm:$0xff]   ;;  %v2467_v30 = vld [vmem:[#allocation3 + $0x48] ss:$16 sps:$4 sm:$0xff]   ;;  %v2470_v31 = vld [vmem:[#allocation3 + $0x24] ss:$16 sps:$4 sm:$0xff]  }
 0x5c6   :  { %1780 = vpow2.f32 %v1608_v32  ;;  %v1609_v39 = vmul.f32 -1.442695, %v1039_v36  ;;  %v2473_v32 = vld [vmem:[#allocation3 + $0x2c] ss:$16 sps:$4 sm:$0xff]   ;;  %v1868_v36 = vld [vmem:[#allocation3 + $0xe4] ss:$16 sps:$4 sm:$0xff]  }
 0x5c7   :  { %v1041_v18 = vpop.f32.mrf.mxu0  ;;  %v1082_v40 = vpop.f32.mrf.mxu1  ;;  %v1869_v37 = vld [vmem:[#allocation3 + $0xec] ss:$16 sps:$4 sm:$0xff]  }
 0x5c8   :  { %1782 = vpow2.f32 %v1609_v39  ;;  %v2612_v38 = vld [vmem:[#allocation19_spill] sm:$0xff] }
 0x5c9   :  { %1784 = vpow2.f32 %v1610_v48  ;;  %v182_v39 = vadd.f32 %v2612_v38, %v2100_v61 }
 0x5ca   :  { %1786 = vtanh.f32 %v1080_v49  ;;  %v2614_v49 = vld [vmem:[#allocation18_spill] sm:$0xff] }
 0x5d3   :  { %v1781_v50 = vpop.eup %1780 }
 0x5d4   :  { %v1093_v51 = vadd.f32 1.0, %v1781_v50  ;;  %v255_v50 = vadd.f32 %v2614_v49, %v2107_v6 }
 0x5d5   :  { %v1783_v52 = vpop.eup %1782 }
 0x5d6   :  { %1788 = vrcp.f32 %v1093_v51  ;;  %v1094_v13 = vadd.f32 1.0, %v1783_v52  ;;  %v1785_v7 = vpop.eup %1784  ;;  %v2615_v52 = vld [vmem:[#allocation20_spill] sm:$0xff] }
 0x5d7   :  { %v1787_v59 = vpop.eup %1786  ;;  %v1095_v24 = vadd.f32 1.0, %v1785_v7 }
 0x5d8   :  { %1790 = vrcp.f32 %v1094_v13  ;;  %v257_v13 = vadd.f32 %v2615_v52, %v2114_v10 }
 0x5d9   :  { %1792 = vrcp.f32 %v1095_v24 }
 0x5e3   :  { %v1789_v34 = vpop.eup %1788 }
 0x5e4   :  { %v1104_v33 = vmul.f32 %v1789_v34, %v1787_v59 }
 0x5e5   :  { %v1791_v16 = vpop.eup %1790 }
 0x5e6   :  { %v1103_v11 = vmul.f32 %v1791_v16, %v2353_v9  ;;  %v1793_v23 = vpop.eup %1792  ;;  %v2431_v9 = vld [vmem:[#allocation3 + $0xa8] ss:$16 sps:$4 sm:$0xff]  }
 0x5e8   :  { %v2399_v4 = vadd.f32 %v1104_v33, %v1103_v11 }
 0x5ea   :  { %1794 = vtanh.f32 %v2399_v4 }
 0x5f7   :  { %v1795_v0 = vpop.eup %1794 }
 0x5f8   :  { %v1107_v3 = vmul.f32 %v1795_v0, %v1793_v23 }
 0x5fa   :  { %v1108_v5 = vpack.c.bf16 %v1107_v3, %v1107_v3 }
 0x5fc   :  { %1149 = vmatmul.mubr.bf16.vlgmr.msra.gmra.mxu0 %v1108_v5  ;;  %1190 = vmatmul.mubr.bf16.vlgmr.msra.gmra.mxu1 %v1108_v5 }
 0x5fd   :  { %1231 = vmatpush1.bf16.msra.mxu0 %v2402_v17  ;;  %1272 = vmatpush1.bf16.msra.mxu1 %v2405_v1 }
 0x5fe   :  { %1232 = vmatprep.subr.bf16.mxu0 %v2408_v14  ;;  %1273 = vmatprep.subr.bf16.mxu1 %v2411_v22 }
 0x5ff   :  { %1262 = vmatprep.mubr.bf16.mxu0 %v2600_v44  ;;  %1303 = vmatprep.mubr.bf16.mxu1 %v2600_v44 }
 0x601   :  { %1233 = vmatpush1.bf16.msra.mxu0 %v2416_v45  ;;  %1274 = vmatpush1.bf16.msra.mxu1 %v2419_v15 }
 0x602   :  { %1234 = vmatprep.subr.bf16.mxu0 %v2422_v63  ;;  %1275 = vmatprep.subr.bf16.mxu1 %v2425_v60 }
 0x605   :  { %1235 = vmatpush1.bf16.msra.mxu0 %v2428_v35  ;;  %1276 = vmatpush1.bf16.msra.mxu1 %v2431_v9 }
 0x606   :  { %1236 = vmatprep.subr.bf16.mxu0 %v2434_v2  ;;  %1277 = vmatprep.subr.bf16.mxu1 %v2437_v62 }
 0x609   :  { %1237 = vmatpush1.bf16.msra.mxu0 %v2440_v12  ;;  %1278 = vmatpush1.bf16.msra.mxu1 %v2443_v8 }
 0x60a   :  { %1238 = vmatprep.subr.bf16.mxu0 %v2446_v20  ;;  %1279 = vmatprep.subr.bf16.mxu1 %v2449_v21 }
 0x60d   :  { %1239 = vmatpush1.bf16.msra.mxu0 %v2452_v25  ;;  %1280 = vmatpush1.bf16.msra.mxu1 %v2455_v26 }
 0x60e   :  { %1240 = vmatprep.subr.bf16.mxu0 %v2458_v27  ;;  %1281 = vmatprep.subr.bf16.mxu1 %v2461_v28 }
 0x611   :  { %1241 = vmatpush1.bf16.msra.mxu0 %v2464_v29  ;;  %1282 = vmatpush1.bf16.msra.mxu1 %v2467_v30 }
 0x612   :  { %1242 = vmatprep.subr.bf16.mxu0 %v2470_v31  ;;  %1283 = vmatprep.subr.bf16.mxu1 %v2473_v32 }
 0x615   :  { %1243 = vmatpush1.bf16.msra.mxu0 %v2069_v53  ;;  %1284 = vmatpush1.bf16.msra.mxu1 %v2071_v54  ;;  %v2613_v53 = vld [vmem:[#allocation21_spill] sm:$0xff] }
 0x616   :  { %1244 = vmatprep.subr.bf16.mxu0 %v2075_v55  ;;  %1285 = vmatprep.subr.bf16.mxu1 %v2077_v56  ;;  %v184_v54 = vadd.f32 %v2613_v53, %v2206_v46 }
 0x619   :  { %1245 = vmatpush1.bf16.msra.mxu0 %v2081_v57  ;;  %1286 = vmatpush1.bf16.msra.mxu1 %v2083_v58 }
 0x61a   :  { %1344 = vmatprep.subr.bf16.mxu0 %v1868_v36  ;;  %1385 = vmatprep.subr.bf16.mxu1 %v1869_v37 }
 0x6bc   :  { %v1150_v18 = vpop.f32.mrf.mxu0  ;;  %v1191_v40 = vpop.f32.mrf.mxu1 }
 0x6bd   :  { %v1151_v19 = vadd.f32 %v1150_v18, %v182_v39  ;;  %v1192_v51 = vadd.f32 %v1191_v40, %v255_v50 }
 0x6be   :  { %v1152_v55 = vpop.f32.mrf.mxu0  ;;  %v1193_v41 = vpop.f32.mrf.mxu1 }
 0x6bf   :  { %v1611_v56 = vmul.f32 -1.442695, %v1151_v19  ;;  %v1153_v42 = vadd.f32 %v1152_v55, %v184_v54  ;;  %v1613_v7 = vmul.f32 -1.442695, %v1192_v51  ;;  %v1194_v59 = vadd.f32 %v1193_v41, %v257_v13 }
 0x6c0   :  { %v1154_v57 = vpop.f32.mrf.mxu0  ;;  %v1195_v43 = vpop.f32.mrf.mxu1 }
 0x6c1   :  { %1796 = vpow2.f32 %v1611_v56  ;;  %v1612_v58 = vmul.f32 -1.442695, %v1153_v42 }
 0x6c2   :  { %v1155_v47 = vpop.f32.mrf.mxu0  ;;  %v1196_v48 = vpop.f32.mrf.mxu1 }
 0x6c3   :  { %1798 = vpow2.f32 %v1612_v58 }
 0x6c4   :  { %1800 = vpow2.f32 %v1613_v7  ;;  %v1700_v7 = vld [vmem:[%s2567_s4 + $0x18] sm:$0xff]  }
 0x6c5   :  { %1802 = vtanh.f32 %v1194_v59  ;;  %v1701_v59 = vld [vmem:[%s2567_s4 + $0x10] sm:$0xff]  }
 0x6ce   :  { %v1797_v34 = vpop.eup %1796 }
 0x6cf   :  { %v1207_v33 = vadd.f32 1.0, %v1797_v34  ;;  %v1702_v34 = vld [vmem:[%s2567_s4 + $0x8] sm:$0xff]  }
 0x6d0   :  { %v1799_v16 = vpop.eup %1798 }
 0x6d1   :  { %1804 = vrcp.f32 %v1207_v33  ;;  %v1208_v24 = vadd.f32 1.0, %v1799_v16  ;;  %v1801_v11 = vpop.eup %1800  ;;  %v1703_v33 = vld [vmem:[%s2567_s4] sm:$0xff]  }
 0x6d2   :  { %v1803_v23 = vpop.eup %1802  ;;  %v1209_v36 = vadd.f32 1.0, %v1801_v11  ;;  %v295_v16 = vld [vmem:[%s2565_s2] sm:$0xf]  ;;  %s1905_s2 = smov 64  }
 0x6d3   :  { %1806 = vrcp.f32 %v1208_v24  ;;  %v2621_v24 = vld [vmem:[#allocation6_spill] sm:$0xff] }
 0x6d4   :  { %1808 = vrcp.f32 %v1209_v36  ;;  %v2622_v11 = vsub.s32 0, %v2621_v24 }
 0x6de   :  { %v1805_v0 = vpop.eup %1804 }
 0x6df   :  { %v1218_v3 = vmul.f32 %v1805_v0, %v1803_v23  ;;  %v300_v23 = vrot.slane %v295_v16, %v2622_v11  ;;  %v2623_v0 = vsub.s32 1, %v2621_v24 }
 0x6e0   :  { %v1807_v5 = vpop.eup %1806 }
 0x6e1   :  { %v1217_v37 = vmul.f32 %v1807_v5, %v2399_v4  ;;  %v1809_v39 = vpop.eup %1808  ;;  %v1871_v4 = vld [vmem:[#allocation3 + $0x28] ss:$16 sps:$4 sm:$0xff]  }
 0x6e3   :  { %v2491_v38 = vadd.f32 %v1218_v3, %v1217_v37  ;;  %v304_v3 = vrot.slane %v295_v16, %v2623_v0 }
 0x6e5   :  { %1810 = vtanh.f32 %v2491_v38 }
 0x6f2   :  { %v1811_v18 = vpop.eup %1810 }
 0x6f3   :  { %v1221_v40 = vmul.f32 %v1811_v18, %v1809_v39 }
 0x6f5   :  { %v1222_v53 = vpack.c.bf16 %v1221_v40, %v1221_v40 }
 0x6f7   :  { %1263 = vmatmul.mubr.bf16.vlgmr.msra.gmra.mxu0 %v1222_v53  ;;  %1304 = vmatmul.mubr.bf16.vlgmr.msra.gmra.mxu1 %v1222_v53 }
 0x6f8   :  { %1345 = vmatpush1.bf16.msra.mxu0 %v2402_v17  ;;  %1386 = vmatpush1.bf16.msra.mxu1 %v2405_v1  ;;  %v1872_v17 = vld [vmem:[#allocation3 + $0x4] ss:$16 sps:$4 sm:$0xff]   ;;  %v1873_v1 = vld [vmem:[#allocation3 + $0xc] ss:$16 sps:$4 sm:$0xff]  }
 0x6f9   :  { %1346 = vmatprep.subr.bf16.mxu0 %v2408_v14  ;;  %1387 = vmatprep.subr.bf16.mxu1 %v2411_v22  ;;  %v1874_v14 = vld [vmem:[#allocation3] ss:$16 sps:$4 sm:$0xff]   ;;  %v1875_v22 = vld [vmem:[#allocation3 + $0x8] ss:$16 sps:$4 sm:$0xff]  }
 0x6fa   :  { %1376 = vmatprep.mubr.bf16.mxu0 %v2600_v44  ;;  %1417 = vmatprep.mubr.bf16.mxu1 %v2600_v44  ;;  %v1870_v44 = vld [vmem:[#allocation3 + $0x20] ss:$16 sps:$4 sm:$0xff]  }
 0x6fc   :  { %1347 = vmatpush1.bf16.msra.mxu0 %v2416_v45  ;;  %1388 = vmatpush1.bf16.msra.mxu1 %v2419_v15  ;;  %v2616_v45 = vmov 0.0   ;;  %v2617_v15 = vld [vmem:[#allocation23_spill] sm:$0xff] }
 0x6fd   :  { %1348 = vmatprep.subr.bf16.mxu0 %v2422_v63  ;;  %1389 = vmatprep.subr.bf16.mxu1 %v2425_v60  ;;  %v186_v63 = vadd.f32 %v2617_v15, %v2100_v61 }
 0x700   :  { %1349 = vmatpush1.bf16.msra.mxu0 %v2428_v35  ;;  %1390 = vmatpush1.bf16.msra.mxu1 %v2431_v9  ;;  %v2618_v9 = vld [vmem:[#allocation25_spill] sm:$0xff] }
 0x701   :  { %1350 = vmatprep.subr.bf16.mxu0 %v2434_v2  ;;  %1391 = vmatprep.subr.bf16.mxu1 %v2437_v62  ;;  %v188_v2 = vadd.f32 %v2618_v9, %v2206_v46 }
 0x704   :  { %1351 = vmatpush1.bf16.msra.mxu0 %v2440_v12  ;;  %1392 = vmatpush1.bf16.msra.mxu1 %v2443_v8 }
 0x705   :  { %1352 = vmatprep.subr.bf16.mxu0 %v2446_v20  ;;  %1393 = vmatprep.subr.bf16.mxu1 %v2449_v21 }
 0x708   :  { %1353 = vmatpush1.bf16.msra.mxu0 %v2452_v25  ;;  %1394 = vmatpush1.bf16.msra.mxu1 %v2455_v26 }
 0x709   :  { %1354 = vmatprep.subr.bf16.mxu0 %v2458_v27  ;;  %1395 = vmatprep.subr.bf16.mxu1 %v2461_v28 }
 0x70c   :  { %1355 = vmatpush1.bf16.msra.mxu0 %v2464_v29  ;;  %1396 = vmatpush1.bf16.msra.mxu1 %v2467_v30  ;;  %v2619_v30 = vld [vmem:[#allocation22_spill] sm:$0xff] }
 0x70d   :  { %1356 = vmatprep.subr.bf16.mxu0 %v2470_v31  ;;  %1397 = vmatprep.subr.bf16.mxu1 %v2473_v32  ;;  %v259_v61 = vadd.f32 %v2619_v30, %v2107_v6  ;;  %v2620_v32 = vld [vmem:[#allocation24_spill] sm:$0xff] }
 0x70e   :  { %v261_v54 = vadd.f32 %v2620_v32, %v2114_v10 }
 0x710   :  { %1357 = vmatpush1.bf16.msra.mxu0 %v1870_v44  ;;  %1398 = vmatpush1.bf16.msra.mxu1 %v1871_v4 }
 0x711   :  { %1358 = vmatprep.subr.bf16.mxu0 %v1872_v17  ;;  %1399 = vmatprep.subr.bf16.mxu1 %v1873_v1 }
 0x714   :  { %1359 = vmatpush1.bf16.msra.mxu0 %v1874_v14  ;;  %1400 = vmatpush1.bf16.msra.mxu1 %v1875_v22  ;;  %v2624_v14 = vsub.s32 2, %v2621_v24 }
 0x715   :  { %1631 = vmatprep.subr.bf16.mxu0 %v2616_v45 }
 0x716   :  { %v308_v22 = vrot.slane %v295_v16, %v2624_v14 }
 0x7b7   :  { %v1264_v60 = vpop.f32.mrf.mxu0  ;;  %v1305_v35 = vpop.f32.mrf.mxu1 }
 0x7b8   :  { %v1265_v62 = vadd.f32 %v1264_v60, %v186_v63  ;;  %v1306_v31 = vadd.f32 %v1305_v35, %v259_v61  ;;  %v2625_v63 = vsub.s32 3, %v2621_v24 }
 0x7b9   :  { %v1266_v12 = vpop.f32.mrf.mxu0  ;;  %v1307_v8 = vpop.f32.mrf.mxu1 }
 0x7ba   :  { %v1614_v20 = vmul.f32 -1.442695, %v1265_v62  ;;  %v1267_v21 = vadd.f32 %v1266_v12, %v188_v2  ;;  %v1616_v46 = vmul.f32 -1.442695, %v1306_v31  ;;  %v1308_v55 = vadd.f32 %v1307_v8, %v261_v54 }
 0x7bb   :  { %v1268_v25 = vpop.f32.mrf.mxu0  ;;  %v1309_v26 = vpop.f32.mrf.mxu1  ;;  %v312_v60 = vrot.slane %v295_v16, %v2625_v63 }
 0x7bc   :  { %1812 = vpow2.f32 %v1614_v20  ;;  %v1615_v27 = vmul.f32 -1.442695, %v1267_v21 }
 0x7bd   :  { %v1269_v28 = vpop.f32.mrf.mxu0  ;;  %v1310_v29 = vpop.f32.mrf.mxu1 }
 0x7be   :  { %1814 = vpow2.f32 %v1615_v27 }
 0x7bf   :  { %1816 = vpow2.f32 %v1616_v46 }
 0x7c9   :  { %v1813_v19 = vpop.eup %1812 }
 0x7ca   :  { %v1321_v41 = vadd.f32 1.0, %v1813_v19  ;;  %v1620_v19 = vld [vmem:[%s2568_s5] ss:$0 sm:$0xff] }
 0x7cb   :  { %v1815_v56 = vpop.eup %1814 }
 0x7cc   :  { %1818 = vrcp.f32 %v1321_v41  ;;  %v1322_v42 = vadd.f32 1.0, %v1815_v56  ;;  %v1817_v57 = vpop.eup %1816 }
 0x7cd   :  { %1820 = vtanh.f32 %v1308_v55  ;;  %v1323_v48 = vadd.f32 1.0, %v1817_v57 }
 0x7ce   :  { %1822 = vrcp.f32 %v1322_v42 }
 0x7cf   :  { %1824 = vrcp.f32 %v1323_v48 }
 0x7d9   :  { %v1819_v43 = vpop.eup %1818 }
 0x7da   :  { %v1821_v58 = vpop.eup %1820 }
 0x7db   :  { %v1823_v47 = vpop.eup %1822  ;;  %v1332_v49 = vmul.f32 %v1821_v58, %v1819_v43 }
 0x7dc   :  { %v1331_v6 = vmul.f32 %v1823_v47, %v2491_v38  ;;  %v1825_v10 = vpop.eup %1824 }
 0x7de   :  { %v1333_v50 = vadd.f32 %v1332_v49, %v1331_v6 }
 0x7e0   :  { %1826 = vtanh.f32 %v1333_v50 }
 0x7ed   :  { %v1827_v51 = vpop.eup %1826 }
 0x7ee   :  { %v1335_v52 = vmul.f32 %v1827_v51, %v1825_v10 }
 0x7f0   :  { %v1336_v13 = vpack.c.bf16 %v1335_v52, %v1335_v52 }
 0x7f2   :  { %1377 = vmatmul.mubr.bf16.vlgmr.msra.gmra.mxu0 %v1336_v13  ;;  %1418 = vmatmul.mubr.bf16.vlgmr.msra.gmra.mxu1 %v1336_v13 }
 0x7f3   :  { %1632 = vmatpush3.bf16.msra.mxu0 %v1700_v7  ;;  %1639 = vmatprep.mubr.msk.bf16.mxu0 %vm1904_vm3, %v2616_v45 }
 0x7f4   :  { %1633 = vmatprep.subr.bf16.mxu0 %v2616_v45 }
 0x7f7   :  { %1634 = vmatpush3.bf16.msra.mxu0 %v1701_v59 }
 0x7f8   :  { %1635 = vmatprep.subr.bf16.mxu0 %v2616_v45 }
 0x7fb   :  { %1636 = vmatpush3.bf16.msra.mxu0 %v1702_v34 }
 0x7fc   :  { %1637 = vmatprep.subr.bf16.mxu0 %v2616_v45 }
 0x7ff   :  { %1638 = vmatpush3.bf16.msra.mxu0 %v1703_v33 }
 0x8b2   :  { %v1378_v5 = vpop.f32.mrf.mxu0  ;;  %v1419_v36 = vpop.f32.mrf.mxu1 }
 0x8b3   :  { %v1379_v37 = vadd.f32 %v1378_v5, %v300_v23  ;;  %v1420_v15 = vadd.f32 %v1419_v36, %v308_v22 }
 0x8b4   :  { %v1380_v38 = vpop.f32.mrf.mxu0  ;;  %v1421_v39 = vpop.f32.mrf.mxu1 }
 0x8b5   :  { %v1617_v18 = vmul.f32 -1.442695, %v1379_v37  ;;  %v1381_v40 = vadd.f32 %v1380_v38, %v304_v3  ;;  %v1619_v35 = vmul.f32 -1.442695, %v1420_v15  ;;  %v1422_v2 = vadd.f32 %v1421_v39, %v312_v60 }
 0x8b6   :  { %v1382_v53 = vpop.f32.mrf.mxu0  ;;  %v1423_v44 = vpop.f32.mrf.mxu1 }
 0x8b7   :  { %1828 = vpow2.f32 %v1617_v18  ;;  %v1618_v4 = vmul.f32 -1.442695, %v1381_v40 }
 0x8b8   :  { %v1383_v17 = vpop.f32.mrf.mxu0  ;;  %v1424_v1 = vpop.f32.mrf.mxu1 }
 0x8b9   :  { %1830 = vpow2.f32 %v1618_v4 }
 0x8ba   :  { %1832 = vpow2.f32 %v1619_v35 }
 0x8c4   :  { %v1829_v9 = vpop.eup %1828 }
 0x8c5   :  { %v1435_v62 = vadd.f32 1.0, %v1829_v9 }
 0x8c6   :  { %v1831_v12 = vpop.eup %1830 }
 0x8c7   :  { %1834 = vrcp.f32 %v1435_v62  ;;  %v1436_v8 = vadd.f32 1.0, %v1831_v12  ;;  %v1833_v20 = vpop.eup %1832 }
 0x8c8   :  { %1836 = vtanh.f32 %v1422_v2  ;;  %v1437_v27 = vadd.f32 1.0, %v1833_v20 }
 0x8c9   :  { %1838 = vrcp.f32 %v1436_v8 }
 0x8ca   :  { %1840 = vrcp.f32 %v1437_v27 }
 0x8d4   :  { %v1835_v21 = vpop.eup %1834 }
 0x8d5   :  { %v1837_v25 = vpop.eup %1836 }
 0x8d6   :  { %v1839_v26 = vpop.eup %1838  ;;  %v1446_v28 = vmul.f32 %v1837_v25, %v1835_v21 }
 0x8d7   :  { %v1445_v29 = vmul.f32 %v1839_v26, %v1333_v50  ;;  %v1841_v61 = vpop.eup %1840 }
 0x8d9   :  { %v1447_v30 = vadd.f32 %v1446_v28, %v1445_v29 }
 0x8db   :  { %1842 = vtanh.f32 %v1447_v30 }
 0x8e8   :  { %v1843_v31 = vpop.eup %1842 }
 0x8e9   :  { %v1449_v32 = vmul.f32 %v1843_v31, %v1841_v61 }
 0x8eb   :  { %v1450_v54 = vpack.c.bf16 %v1449_v32, %v1449_v32 }
 0x8ed   :  { %1467 = vrot.lane.b32.xlu0 %v1450_v54, %s1905_s2 }
 0x95f   :  { %v1468_v46 = vpop.permute.xlu0 %1467 }
 0x960   :  { %1640 = vmatmul.mubr.msk.bf16.vlgmr.msra.gmra.mxu0 %vm1493_vm4, %v1468_v46 }
 0xa20   :  { %v1531_v55 = vpop.f32.mrf.mxu0 }
 0xa21   :  { %v1532_v41 = vadd.f32 %v1620_v19, %v1531_v55 }
 0xa22   :  { %v1641_v56 = vpop.f32.mrf.mxu0 }
 0xa23   :  { %1537 = vst [vmem:[%s2569_s6] sm:$0xff] %v1532_v41 }
 0xa24   :  { %v1534_v45 = vpop.f32.mrf.mxu0 }
 0xa26   :  { %v1642_v42 = vpop.f32.mrf.mxu0 }
 0xa27   :  { %1542 = vsyncpa [#allocation4], 1 }

</bundles_post_ra>
